<compile_context>
chip_gen: v7x
topology: tpu7x:2x2x1
jax: 0.10.0
libtpu: 0.0.40
codegen_flags: <defaults>
</compile_context>

<pallas_src>
import functools

import jax
import jax.numpy as jnp
from jax import lax
from jax.experimental import pallas as pl
from jax.experimental.pallas import tpu as pltpu


def _round_up(v, m):
    return (v + m - 1) // m * m


def _raki_kernel(x_ref, w_ref, o_ref, *, layers, n_batch, hw, row_stride,
                 oh_out, ow_out):
    """x_ref: (N, Cin, H*W) f32.  w_ref: packed weights (R, Cmax) f32.
    o_ref: (N, Cout, oh_out, ow_out) f32.

    `layers` is a static tuple of (cout, cin, max_off, taps) with
    taps = ((w_row_offset, position_offset), ...).  Activations are lane-dense
    (channels, positions) with positions = n*H*W + h*W + w at full extent."""
    # Channel-major, lane-dense input: (Cin, N*H*W).  H*W is a multiple of 128
    # here, so this concat is a tile-aligned placement, not a lane relayout.
    if n_batch > 1:
        z = jnp.concatenate([x_ref[b] for b in range(n_batch)], axis=-1)
    else:
        z = x_ref[0]
    z = z.astype(jnp.float32)

    s = n_batch * hw
    last = len(layers) - 1
    for li, (cout, cin, max_off, taps) in enumerate(layers):
        s_out = s - max_off  # positions that still have every tap in range
        acc = None
        for w_row, pos_off in taps:
            # (cout, cin) tap weight, pre-transposed + 8-row aligned in the pack.
            wt = w_ref[pl.ds(w_row, cout), pl.ds(0, cin)]
            # Tap view: zt[:, p] == z[:, p + pos_off] (static contiguous slice).
            zt = z[:, pos_off:pos_off + s_out]
            part = jnp.dot(wt, zt, preferred_element_type=jnp.float32)
            acc = part if acc is None else acc + part
        z = acc if li == last else jnp.maximum(acc, 0.0)
        s = s_out

    # Fused crop + NCHW store: o[b, :, i, :] = z[:, b*H*W + i*W : ... + ow_out].
    for b in range(n_batch):
        for i in range(oh_out):
            start = b * hw + i * row_stride
            o_ref[b, :, i, :] = z[:, start:start + ow_out]


def _pack_weights(weights, dil, width):
    """weights: HWIO arrays.  Returns (packed (R, Cmax) f32 buffer, layer specs).

    Each tap weight w[kh, kw] is stored transposed as a (Cout, Cin) block at an
    8-aligned row offset so the kernel can load it with a clean static slice."""
    col_w = max(int(w.shape[2]) for w in weights)
    blocks, specs = [], []
    row = 0
    for w in weights:
        kh, kw, cin, cout = (int(d) for d in w.shape)
        span = _round_up(cout, 8)
        taps = []
        for ih in range(kh):
            for iw in range(kw):
                blk = jnp.zeros((span, col_w), jnp.float32)
                blk = blk.at[:cout, :cin].set(
                    jnp.transpose(w[ih, iw]).astype(jnp.float32))
                blocks.append(blk)
                taps.append((row, ih * width + iw * dil))
                row += span
        max_off = (kh - 1) * width + (kw - 1) * dil
        specs.append((cout, cin, max_off, tuple(taps)))
    return jnp.concatenate(blocks, axis=0), tuple(specs)


def raki_forward(x_nchw, w1, w2, w3, *, dilate_rate):
    """x_nchw: (N, Cin, H, W) float32.  Weights are HWIO.
    Returns (N, Cout, H3, W3) float32 (same semantics as the PyTorch module)."""
    n, cin, h, width = (int(d) for d in x_nchw.shape)
    weights = (w1, w2, w3)
    packed, layers = _pack_weights(weights, dilate_rate, width)

    oh, ow = h, width
    for w in weights:
        oh -= int(w.shape[0]) - 1
        ow -= (int(w.shape[1]) - 1) * dilate_rate
    c_out = int(w3.shape[3])

    # Free, contiguous reshape (no NCHW->NHWC transpose launch).
    x_flat = x_nchw.reshape(n, cin, h * width).astype(jnp.float32)

    kern = functools.partial(_raki_kernel, layers=layers, n_batch=n,
                             hw=h * width, row_stride=width,
                             oh_out=oh, ow_out=ow)
    return pl.pallas_call(
        kern,
        out_shape=jax.ShapeDtypeStruct((n, c_out, oh, ow), jnp.float32),
        in_specs=[pl.BlockSpec(memory_space=pltpu.MemorySpace.VMEM)] * 2,
        out_specs=pl.BlockSpec(memory_space=pltpu.MemorySpace.VMEM),
    )(x_flat, packed)


def _trunc_normal(key, shape, std=0.1, a=-0.2, b=0.2):
    # matches nn.init.trunc_normal_(std=0.1, a=-0.2, b=0.2)
    return jax.random.truncated_normal(key, a / std, b / std, shape, jnp.float32) * std


def _reference_forward(x_nchw, w1, w2, w3, dilate_rate):
    # pure-JAX reference using lax.conv_general_dilated (NHWC / HWIO)
    x = jnp.transpose(x_nchw, (0, 2, 3, 1))
    dn = ("NHWC", "HWIO", "NHWC")
    p = lax.Precision.HIGHEST
    y = lax.conv_general_dilated(x, w1, (1, 1), "VALID",
                                 rhs_dilation=(1, dilate_rate),
                                 dimension_numbers=dn, precision=p)
    y = jnp.maximum(y, 0.0)
    y = lax.conv_general_dilated(y, w2, (1, 1), "VALID",
                                 rhs_dilation=(1, dilate_rate),
                                 dimension_numbers=dn, precision=p)
    y = jnp.maximum(y, 0.0)
    y = lax.conv_general_dilated(y, w3, (1, 1), "VALID",
                                 rhs_dilation=(1, dilate_rate),
                                 dimension_numbers=dn, precision=p)
    return jnp.transpose(y, (0, 3, 1, 2))


if __name__ == "__main__":
    in_dim = 4
    dilate_rate = 4
    kernel_1, kernel_2, kernel_3 = (5, 2), (1, 1), (3, 2)

    key = jax.random.PRNGKey(0)
    kx, kw1, kw2, kw3 = jax.random.split(key, 4)

    # Input: NCHW, like the PyTorch module.
    x = jax.random.normal(kx, (2, in_dim, 16, 16), jnp.float32)

    # Deterministic weights (HWIO layout), trunc_normal(std=0.1, a=-0.2, b=0.2).
    w1 = _trunc_normal(kw1, (kernel_1[0], kernel_1[1], in_dim, 32))
    w2 = _trunc_normal(kw2, (kernel_2[0], kernel_2[1], 32, 8))
    w3 = _trunc_normal(kw3, (kernel_3[0], kernel_3[1], 8, dilate_rate - 1))

    fwd = jax.jit(functools.partial(raki_forward, dilate_rate=dilate_rate))
    out = jax.block_until_ready(fwd(x, w1, w2, w3))

    ref = _reference_forward(x, w1, w2, w3, dilate_rate)
    assert out.shape == ref.shape, (out.shape, ref.shape)
    assert jnp.allclose(out, ref, atol=1e-4, rtol=1e-4), \
        float(jnp.max(jnp.abs(out - ref)))

    print("KERNEL_OK")
</pallas_src>

<mosaic_0001>
module attributes {stable_mosaic.version = 11 : i64} {
  func.func @_raki_kernel(%arg0: memref<2x4x256xf32, #tpu.memory_space<vmem>>, %arg1: memref<376x32xf32, #tpu.memory_space<vmem>>, %arg2: memref<2x3x10x8xf32, #tpu.memory_space<vmem>>) attributes {dimension_semantics = [], scalar_prefetch = 0 : i64, scratch_operands = 0 : i64, tpu.core_type = #tpu.core_type<tc>} {
    %c0 = arith.constant 0 : index
    %c0_0 = arith.constant 0 : index
    %c0_1 = arith.constant 0 : index
    %0 = vector.load %arg0[%c0, %c0_0, %c0_1] : memref<2x4x256xf32, #tpu.memory_space<vmem>>, vector<1x4x256xf32>
    %1 = vector.shape_cast %0 : vector<1x4x256xf32> to vector<4x256xf32>
    %c1 = arith.constant 1 : index
    %c0_2 = arith.constant 0 : index
    %c0_3 = arith.constant 0 : index
    %2 = vector.load %arg0[%c1, %c0_2, %c0_3] : memref<2x4x256xf32, #tpu.memory_space<vmem>>, vector<1x4x256xf32>
    %3 = vector.shape_cast %2 : vector<1x4x256xf32> to vector<4x256xf32>
    %4 = tpu.concatenate %1, %3 in 1 : vector<4x256xf32>, vector<4x256xf32> -> vector<4x512xf32>
    %c0_4 = arith.constant 0 : index
    %c0_5 = arith.constant 0 : index
    %5 = vector.load %arg1[%c0_4, %c0_5] : memref<376x32xf32, #tpu.memory_space<vmem>>, vector<32x4xf32>
    %6 = vector.extract_strided_slice %4 {offsets = [0, 0], sizes = [4, 444], strides = [1, 1]} : vector<4x512xf32> to vector<4x444xf32>
    %cst = arith.constant dense<0.000000e+00> : vector<32x444xf32>
    %7 = tpu.matmul %5, %6, %cst {dimension_numbers = #tpu.dot_dimension_numbers<[1], [0], [0], [1], [0, 0, 1, 1], [], []>} : vector<32x4xf32>, vector<4x444xf32>, vector<32x444xf32> -> vector<32x444xf32>
    %c32 = arith.constant 32 : index
    %c0_6 = arith.constant 0 : index
    %8 = vector.load %arg1[%c32, %c0_6] : memref<376x32xf32, #tpu.memory_space<vmem>>, vector<32x4xf32>
    %9 = vector.extract_strided_slice %4 {offsets = [0, 4], sizes = [4, 444], strides = [1, 1]} : vector<4x512xf32> to vector<4x444xf32>
    %cst_7 = arith.constant dense<0.000000e+00> : vector<32x444xf32>
    %10 = tpu.matmul %8, %9, %cst_7 {dimension_numbers = #tpu.dot_dimension_numbers<[1], [0], [0], [1], [0, 0, 1, 1], [], []>} : vector<32x4xf32>, vector<4x444xf32>, vector<32x444xf32> -> vector<32x444xf32>
    %11 = arith.addf %7, %10 : vector<32x444xf32>
    %c64 = arith.constant 64 : index
    %c0_8 = arith.constant 0 : index
    %12 = vector.load %arg1[%c64, %c0_8] : memref<376x32xf32, #tpu.memory_space<vmem>>, vector<32x4xf32>
    %13 = vector.extract_strided_slice %4 {offsets = [0, 16], sizes = [4, 444], strides = [1, 1]} : vector<4x512xf32> to vector<4x444xf32>
    %cst_9 = arith.constant dense<0.000000e+00> : vector<32x444xf32>
    %14 = tpu.matmul %12, %13, %cst_9 {dimension_numbers = #tpu.dot_dimension_numbers<[1], [0], [0], [1], [0, 0, 1, 1], [], []>} : vector<32x4xf32>, vector<4x444xf32>, vector<32x444xf32> -> vector<32x444xf32>
    %15 = arith.addf %11, %14 : vector<32x444xf32>
    %c96 = arith.constant 96 : index
    %c0_10 = arith.constant 0 : index
    %16 = vector.load %arg1[%c96, %c0_10] : memref<376x32xf32, #tpu.memory_space<vmem>>, vector<32x4xf32>
    %17 = vector.extract_strided_slice %4 {offsets = [0, 20], sizes = [4, 444], strides = [1, 1]} : vector<4x512xf32> to vector<4x444xf32>
    %cst_11 = arith.constant dense<0.000000e+00> : vector<32x444xf32>
    %18 = tpu.matmul %16, %17, %cst_11 {dimension_numbers = #tpu.dot_dimension_numbers<[1], [0], [0], [1], [0, 0, 1, 1], [], []>} : vector<32x4xf32>, vector<4x444xf32>, vector<32x444xf32> -> vector<32x444xf32>
    %19 = arith.addf %15, %18 : vector<32x444xf32>
    %c128 = arith.constant 128 : index
    %c0_12 = arith.constant 0 : index
    %20 = vector.load %arg1[%c128, %c0_12] : memref<376x32xf32, #tpu.memory_space<vmem>>, vector<32x4xf32>
    %21 = vector.extract_strided_slice %4 {offsets = [0, 32], sizes = [4, 444], strides = [1, 1]} : vector<4x512xf32> to vector<4x444xf32>
    %cst_13 = arith.constant dense<0.000000e+00> : vector<32x444xf32>
    %22 = tpu.matmul %20, %21, %cst_13 {dimension_numbers = #tpu.dot_dimension_numbers<[1], [0], [0], [1], [0, 0, 1, 1], [], []>} : vector<32x4xf32>, vector<4x444xf32>, vector<32x444xf32> -> vector<32x444xf32>
    %23 = arith.addf %19, %22 : vector<32x444xf32>
    %c160 = arith.constant 160 : index
    %c0_14 = arith.constant 0 : index
    %24 = vector.load %arg1[%c160, %c0_14] : memref<376x32xf32, #tpu.memory_space<vmem>>, vector<32x4xf32>
    %25 = vector.extract_strided_slice %4 {offsets = [0, 36], sizes = [4, 444], strides = [1, 1]} : vector<4x512xf32> to vector<4x444xf32>
    %cst_15 = arith.constant dense<0.000000e+00> : vector<32x444xf32>
    %26 = tpu.matmul %24, %25, %cst_15 {dimension_numbers = #tpu.dot_dimension_numbers<[1], [0], [0], [1], [0, 0, 1, 1], [], []>} : vector<32x4xf32>, vector<4x444xf32>, vector<32x444xf32> -> vector<32x444xf32>
    %27 = arith.addf %23, %26 : vector<32x444xf32>
    %c192 = arith.constant 192 : index
    %c0_16 = arith.constant 0 : index
    %28 = vector.load %arg1[%c192, %c0_16] : memref<376x32xf32, #tpu.memory_space<vmem>>, vector<32x4xf32>
    %29 = vector.extract_strided_slice %4 {offsets = [0, 48], sizes = [4, 444], strides = [1, 1]} : vector<4x512xf32> to vector<4x444xf32>
    %cst_17 = arith.constant dense<0.000000e+00> : vector<32x444xf32>
    %30 = tpu.matmul %28, %29, %cst_17 {dimension_numbers = #tpu.dot_dimension_numbers<[1], [0], [0], [1], [0, 0, 1, 1], [], []>} : vector<32x4xf32>, vector<4x444xf32>, vector<32x444xf32> -> vector<32x444xf32>
    %31 = arith.addf %27, %30 : vector<32x444xf32>
    %c224 = arith.constant 224 : index
    %c0_18 = arith.constant 0 : index
    %32 = vector.load %arg1[%c224, %c0_18] : memref<376x32xf32, #tpu.memory_space<vmem>>, vector<32x4xf32>
    %33 = vector.extract_strided_slice %4 {offsets = [0, 52], sizes = [4, 444], strides = [1, 1]} : vector<4x512xf32> to vector<4x444xf32>
    %cst_19 = arith.constant dense<0.000000e+00> : vector<32x444xf32>
    %34 = tpu.matmul %32, %33, %cst_19 {dimension_numbers = #tpu.dot_dimension_numbers<[1], [0], [0], [1], [0, 0, 1, 1], [], []>} : vector<32x4xf32>, vector<4x444xf32>, vector<32x444xf32> -> vector<32x444xf32>
    %35 = arith.addf %31, %34 : vector<32x444xf32>
    %c256 = arith.constant 256 : index
    %c0_20 = arith.constant 0 : index
    %36 = vector.load %arg1[%c256, %c0_20] : memref<376x32xf32, #tpu.memory_space<vmem>>, vector<32x4xf32>
    %37 = vector.extract_strided_slice %4 {offsets = [0, 64], sizes = [4, 444], strides = [1, 1]} : vector<4x512xf32> to vector<4x444xf32>
    %cst_21 = arith.constant dense<0.000000e+00> : vector<32x444xf32>
    %38 = tpu.matmul %36, %37, %cst_21 {dimension_numbers = #tpu.dot_dimension_numbers<[1], [0], [0], [1], [0, 0, 1, 1], [], []>} : vector<32x4xf32>, vector<4x444xf32>, vector<32x444xf32> -> vector<32x444xf32>
    %39 = arith.addf %35, %38 : vector<32x444xf32>
    %c288 = arith.constant 288 : index
    %c0_22 = arith.constant 0 : index
    %40 = vector.load %arg1[%c288, %c0_22] : memref<376x32xf32, #tpu.memory_space<vmem>>, vector<32x4xf32>
    %41 = vector.extract_strided_slice %4 {offsets = [0, 68], sizes = [4, 444], strides = [1, 1]} : vector<4x512xf32> to vector<4x444xf32>
    %cst_23 = arith.constant dense<0.000000e+00> : vector<32x444xf32>
    %42 = tpu.matmul %40, %41, %cst_23 {dimension_numbers = #tpu.dot_dimension_numbers<[1], [0], [0], [1], [0, 0, 1, 1], [], []>} : vector<32x4xf32>, vector<4x444xf32>, vector<32x444xf32> -> vector<32x444xf32>
    %43 = arith.addf %39, %42 : vector<32x444xf32>
    %cst_24 = arith.constant 0.000000e+00 : f32
    %44 = vector.broadcast %cst_24 : f32 to vector<32x444xf32>
    %45 = arith.maximumf %43, %44 : vector<32x444xf32>
    %c320 = arith.constant 320 : index
    %c0_25 = arith.constant 0 : index
    %46 = vector.load %arg1[%c320, %c0_25] : memref<376x32xf32, #tpu.memory_space<vmem>>, vector<8x32xf32>
    %cst_26 = arith.constant dense<0.000000e+00> : vector<8x444xf32>
    %47 = tpu.matmul %46, %45, %cst_26 {dimension_numbers = #tpu.dot_dimension_numbers<[1], [0], [0], [1], [0, 0, 1, 1], [], []>} : vector<8x32xf32>, vector<32x444xf32>, vector<8x444xf32> -> vector<8x444xf32>
    %cst_27 = arith.constant 0.000000e+00 : f32
    %48 = vector.broadcast %cst_27 : f32 to vector<8x444xf32>
    %49 = arith.maximumf %47, %48 : vector<8x444xf32>
    %c328 = arith.constant 328 : index
    %c0_28 = arith.constant 0 : index
    %50 = vector.load %arg1[%c328, %c0_28] : memref<376x32xf32, #tpu.memory_space<vmem>>, vector<3x8xf32>
    %51 = vector.extract_strided_slice %49 {offsets = [0, 0], sizes = [8, 408], strides = [1, 1]} : vector<8x444xf32> to vector<8x408xf32>
    %cst_29 = arith.constant dense<0.000000e+00> : vector<3x408xf32>
    %52 = tpu.matmul %50, %51, %cst_29 {dimension_numbers = #tpu.dot_dimension_numbers<[1], [0], [0], [1], [0, 0, 1, 1], [], []>} : vector<3x8xf32>, vector<8x408xf32>, vector<3x408xf32> -> vector<3x408xf32>
    %c336 = arith.constant 336 : index
    %c0_30 = arith.constant 0 : index
    %53 = vector.load %arg1[%c336, %c0_30] : memref<376x32xf32, #tpu.memory_space<vmem>>, vector<3x8xf32>
    %54 = vector.extract_strided_slice %49 {offsets = [0, 4], sizes = [8, 408], strides = [1, 1]} : vector<8x444xf32> to vector<8x408xf32>
    %cst_31 = arith.constant dense<0.000000e+00> : vector<3x408xf32>
    %55 = tpu.matmul %53, %54, %cst_31 {dimension_numbers = #tpu.dot_dimension_numbers<[1], [0], [0], [1], [0, 0, 1, 1], [], []>} : vector<3x8xf32>, vector<8x408xf32>, vector<3x408xf32> -> vector<3x408xf32>
    %56 = arith.addf %52, %55 : vector<3x408xf32>
    %c344 = arith.constant 344 : index
    %c0_32 = arith.constant 0 : index
    %57 = vector.load %arg1[%c344, %c0_32] : memref<376x32xf32, #tpu.memory_space<vmem>>, vector<3x8xf32>
    %58 = vector.extract_strided_slice %49 {offsets = [0, 16], sizes = [8, 408], strides = [1, 1]} : vector<8x444xf32> to vector<8x408xf32>
    %cst_33 = arith.constant dense<0.000000e+00> : vector<3x408xf32>
    %59 = tpu.matmul %57, %58, %cst_33 {dimension_numbers = #tpu.dot_dimension_numbers<[1], [0], [0], [1], [0, 0, 1, 1], [], []>} : vector<3x8xf32>, vector<8x408xf32>, vector<3x408xf32> -> vector<3x408xf32>
    %60 = arith.addf %56, %59 : vector<3x408xf32>
    %c352 = arith.constant 352 : index
    %c0_34 = arith.constant 0 : index
    %61 = vector.load %arg1[%c352, %c0_34] : memref<376x32xf32, #tpu.memory_space<vmem>>, vector<3x8xf32>
    %62 = vector.extract_strided_slice %49 {offsets = [0, 20], sizes = [8, 408], strides = [1, 1]} : vector<8x444xf32> to vector<8x408xf32>
    %cst_35 = arith.constant dense<0.000000e+00> : vector<3x408xf32>
    %63 = tpu.matmul %61, %62, %cst_35 {dimension_numbers = #tpu.dot_dimension_numbers<[1], [0], [0], [1], [0, 0, 1, 1], [], []>} : vector<3x8xf32>, vector<8x408xf32>, vector<3x408xf32> -> vector<3x408xf32>
    %64 = arith.addf %60, %63 : vector<3x408xf32>
    %c360 = arith.constant 360 : index
    %c0_36 = arith.constant 0 : index
    %65 = vector.load %arg1[%c360, %c0_36] : memref<376x32xf32, #tpu.memory_space<vmem>>, vector<3x8xf32>
    %66 = vector.extract_strided_slice %49 {offsets = [0, 32], sizes = [8, 408], strides = [1, 1]} : vector<8x444xf32> to vector<8x408xf32>
    %cst_37 = arith.constant dense<0.000000e+00> : vector<3x408xf32>
    %67 = tpu.matmul %65, %66, %cst_37 {dimension_numbers = #tpu.dot_dimension_numbers<[1], [0], [0], [1], [0, 0, 1, 1], [], []>} : vector<3x8xf32>, vector<8x408xf32>, vector<3x408xf32> -> vector<3x408xf32>
    %68 = arith.addf %64, %67 : vector<3x408xf32>
    %c368 = arith.constant 368 : index
    %c0_38 = arith.constant 0 : index
    %69 = vector.load %arg1[%c368, %c0_38] : memref<376x32xf32, #tpu.memory_space<vmem>>, vector<3x8xf32>
    %70 = vector.extract_strided_slice %49 {offsets = [0, 36], sizes = [8, 408], strides = [1, 1]} : vector<8x444xf32> to vector<8x408xf32>
    %cst_39 = arith.constant dense<0.000000e+00> : vector<3x408xf32>
    %71 = tpu.matmul %69, %70, %cst_39 {dimension_numbers = #tpu.dot_dimension_numbers<[1], [0], [0], [1], [0, 0, 1, 1], [], []>} : vector<3x8xf32>, vector<8x408xf32>, vector<3x408xf32> -> vector<3x408xf32>
    %72 = arith.addf %68, %71 : vector<3x408xf32>
    %73 = vector.extract_strided_slice %72 {offsets = [0, 0], sizes = [3, 8], strides = [1, 1]} : vector<3x408xf32> to vector<3x8xf32>
    %c0_40 = arith.constant 0 : index
    %c0_41 = arith.constant 0 : index
    %c0_42 = arith.constant 0 : index
    %c0_43 = arith.constant 0 : index
    %74 = vector.load %arg2[%c0_40, %c0_41, %c0_42, %c0_43] : memref<2x3x10x8xf32, #tpu.memory_space<vmem>>, vector<1x3x1x8xf32>
    %75 = vector.shape_cast %74 : vector<1x3x1x8xf32> to vector<3x8xf32>
    %76 = vector.shape_cast %73 : vector<3x8xf32> to vector<1x3x1x8xf32>
    tpu.vector_store %arg2[%c0_40, %c0_41, %c0_42, %c0_43], %76 {strides = array<i32>} : memref<2x3x10x8xf32, #tpu.memory_space<vmem>>, vector<1x3x1x8xf32>,
    %77 = vector.extract_strided_slice %72 {offsets = [0, 16], sizes = [3, 8], strides = [1, 1]} : vector<3x408xf32> to vector<3x8xf32>
    %c0_44 = arith.constant 0 : index
    %c0_45 = arith.constant 0 : index
    %c1_46 = arith.constant 1 : index
    %c0_47 = arith.constant 0 : index
    %78 = vector.load %arg2[%c0_44, %c0_45, %c1_46, %c0_47] : memref<2x3x10x8xf32, #tpu.memory_space<vmem>>, vector<1x3x1x8xf32>
    %79 = vector.shape_cast %78 : vector<1x3x1x8xf32> to vector<3x8xf32>
    %80 = vector.shape_cast %77 : vector<3x8xf32> to vector<1x3x1x8xf32>
    tpu.vector_store %arg2[%c0_44, %c0_45, %c1_46, %c0_47], %80 {strides = array<i32>} : memref<2x3x10x8xf32, #tpu.memory_space<vmem>>, vector<1x3x1x8xf32>,
    %81 = vector.extract_strided_slice %72 {offsets = [0, 32], sizes = [3, 8], strides = [1, 1]} : vector<3x408xf32> to vector<3x8xf32>
    %c0_48 = arith.constant 0 : index
    %c0_49 = arith.constant 0 : index
    %c2 = arith.constant 2 : index
    %c0_50 = arith.constant 0 : index
    %82 = vector.load %arg2[%c0_48, %c0_49, %c2, %c0_50] : memref<2x3x10x8xf32, #tpu.memory_space<vmem>>, vector<1x3x1x8xf32>
    %83 = vector.shape_cast %82 : vector<1x3x1x8xf32> to vector<3x8xf32>
    %84 = vector.shape_cast %81 : vector<3x8xf32> to vector<1x3x1x8xf32>
    tpu.vector_store %arg2[%c0_48, %c0_49, %c2, %c0_50], %84 {strides = array<i32>} : memref<2x3x10x8xf32, #tpu.memory_space<vmem>>, vector<1x3x1x8xf32>,
    %85 = vector.extract_strided_slice %72 {offsets = [0, 48], sizes = [3, 8], strides = [1, 1]} : vector<3x408xf32> to vector<3x8xf32>
    %c0_51 = arith.constant 0 : index
    %c0_52 = arith.constant 0 : index
    %c3 = arith.constant 3 : index
    %c0_53 = arith.constant 0 : index
    %86 = vector.load %arg2[%c0_51, %c0_52, %c3, %c0_53] : memref<2x3x10x8xf32, #tpu.memory_space<vmem>>, vector<1x3x1x8xf32>
    %87 = vector.shape_cast %86 : vector<1x3x1x8xf32> to vector<3x8xf32>
    %88 = vector.shape_cast %85 : vector<3x8xf32> to vector<1x3x1x8xf32>
    tpu.vector_store %arg2[%c0_51, %c0_52, %c3, %c0_53], %88 {strides = array<i32>} : memref<2x3x10x8xf32, #tpu.memory_space<vmem>>, vector<1x3x1x8xf32>,
    %89 = vector.extract_strided_slice %72 {offsets = [0, 64], sizes = [3, 8], strides = [1, 1]} : vector<3x408xf32> to vector<3x8xf32>
    %c0_54 = arith.constant 0 : index
    %c0_55 = arith.constant 0 : index
    %c4 = arith.constant 4 : index
    %c0_56 = arith.constant 0 : index
    %90 = vector.load %arg2[%c0_54, %c0_55, %c4, %c0_56] : memref<2x3x10x8xf32, #tpu.memory_space<vmem>>, vector<1x3x1x8xf32>
    %91 = vector.shape_cast %90 : vector<1x3x1x8xf32> to vector<3x8xf32>
    %92 = vector.shape_cast %89 : vector<3x8xf32> to vector<1x3x1x8xf32>
    tpu.vector_store %arg2[%c0_54, %c0_55, %c4, %c0_56], %92 {strides = array<i32>} : memref<2x3x10x8xf32, #tpu.memory_space<vmem>>, vector<1x3x1x8xf32>,
    %93 = vector.extract_strided_slice %72 {offsets = [0, 80], sizes = [3, 8], strides = [1, 1]} : vector<3x408xf32> to vector<3x8xf32>
    %c0_57 = arith.constant 0 : index
    %c0_58 = arith.constant 0 : index
    %c5 = arith.constant 5 : index
    %c0_59 = arith.constant 0 : index
    %94 = vector.load %arg2[%c0_57, %c0_58, %c5, %c0_59] : memref<2x3x10x8xf32, #tpu.memory_space<vmem>>, vector<1x3x1x8xf32>
    %95 = vector.shape_cast %94 : vector<1x3x1x8xf32> to vector<3x8xf32>
    %96 = vector.shape_cast %93 : vector<3x8xf32> to vector<1x3x1x8xf32>
    tpu.vector_store %arg2[%c0_57, %c0_58, %c5, %c0_59], %96 {strides = array<i32>} : memref<2x3x10x8xf32, #tpu.memory_space<vmem>>, vector<1x3x1x8xf32>,
    %97 = vector.extract_strided_slice %72 {offsets = [0, 96], sizes = [3, 8], strides = [1, 1]} : vector<3x408xf32> to vector<3x8xf32>
    %c0_60 = arith.constant 0 : index
    %c0_61 = arith.constant 0 : index
    %c6 = arith.constant 6 : index
    %c0_62 = arith.constant 0 : index
    %98 = vector.load %arg2[%c0_60, %c0_61, %c6, %c0_62] : memref<2x3x10x8xf32, #tpu.memory_space<vmem>>, vector<1x3x1x8xf32>
    %99 = vector.shape_cast %98 : vector<1x3x1x8xf32> to vector<3x8xf32>
    %100 = vector.shape_cast %97 : vector<3x8xf32> to vector<1x3x1x8xf32>
    tpu.vector_store %arg2[%c0_60, %c0_61, %c6, %c0_62], %100 {strides = array<i32>} : memref<2x3x10x8xf32, #tpu.memory_space<vmem>>, vector<1x3x1x8xf32>,
    %101 = vector.extract_strided_slice %72 {offsets = [0, 112], sizes = [3, 8], strides = [1, 1]} : vector<3x408xf32> to vector<3x8xf32>
    %c0_63 = arith.constant 0 : index
    %c0_64 = arith.constant 0 : index
    %c7 = arith.constant 7 : index
    %c0_65 = arith.constant 0 : index
    %102 = vector.load %arg2[%c0_63, %c0_64, %c7, %c0_65] : memref<2x3x10x8xf32, #tpu.memory_space<vmem>>, vector<1x3x1x8xf32>
    %103 = vector.shape_cast %102 : vector<1x3x1x8xf32> to vector<3x8xf32>
    %104 = vector.shape_cast %101 : vector<3x8xf32> to vector<1x3x1x8xf32>
    tpu.vector_store %arg2[%c0_63, %c0_64, %c7, %c0_65], %104 {strides = array<i32>} : memref<2x3x10x8xf32, #tpu.memory_space<vmem>>, vector<1x3x1x8xf32>,
    %105 = vector.extract_strided_slice %72 {offsets = [0, 128], sizes = [3, 8], strides = [1, 1]} : vector<3x408xf32> to vector<3x8xf32>
    %c0_66 = arith.constant 0 : index
    %c0_67 = arith.constant 0 : index
    %c8 = arith.constant 8 : index
    %c0_68 = arith.constant 0 : index
    %106 = vector.load %arg2[%c0_66, %c0_67, %c8, %c0_68] : memref<2x3x10x8xf32, #tpu.memory_space<vmem>>, vector<1x3x1x8xf32>
    %107 = vector.shape_cast %106 : vector<1x3x1x8xf32> to vector<3x8xf32>
    %108 = vector.shape_cast %105 : vector<3x8xf32> to vector<1x3x1x8xf32>
    tpu.vector_store %arg2[%c0_66, %c0_67, %c8, %c0_68], %108 {strides = array<i32>} : memref<2x3x10x8xf32, #tpu.memory_space<vmem>>, vector<1x3x1x8xf32>,
    %109 = vector.extract_strided_slice %72 {offsets = [0, 144], sizes = [3, 8], strides = [1, 1]} : vector<3x408xf32> to vector<3x8xf32>
    %c0_69 = arith.constant 0 : index
    %c0_70 = arith.constant 0 : index
    %c9 = arith.constant 9 : index
    %c0_71 = arith.constant 0 : index
    %110 = vector.load %arg2[%c0_69, %c0_70, %c9, %c0_71] : memref<2x3x10x8xf32, #tpu.memory_space<vmem>>, vector<1x3x1x8xf32>
    %111 = vector.shape_cast %110 : vector<1x3x1x8xf32> to vector<3x8xf32>
    %112 = vector.shape_cast %109 : vector<3x8xf32> to vector<1x3x1x8xf32>
    tpu.vector_store %arg2[%c0_69, %c0_70, %c9, %c0_71], %112 {strides = array<i32>} : memref<2x3x10x8xf32, #tpu.memory_space<vmem>>, vector<1x3x1x8xf32>,
    %113 = vector.extract_strided_slice %72 {offsets = [0, 256], sizes = [3, 8], strides = [1, 1]} : vector<3x408xf32> to vector<3x8xf32>
    %c1_72 = arith.constant 1 : index
    %c0_73 = arith.constant 0 : index
    %c0_74 = arith.constant 0 : index
    %c0_75 = arith.constant 0 : index
    %114 = vector.load %arg2[%c1_72, %c0_73, %c0_74, %c0_75] : memref<2x3x10x8xf32, #tpu.memory_space<vmem>>, vector<1x3x1x8xf32>
    %115 = vector.shape_cast %114 : vector<1x3x1x8xf32> to vector<3x8xf32>
    %116 = vector.shape_cast %113 : vector<3x8xf32> to vector<1x3x1x8xf32>
    tpu.vector_store %arg2[%c1_72, %c0_73, %c0_74, %c0_75], %116 {strides = array<i32>} : memref<2x3x10x8xf32, #tpu.memory_space<vmem>>, vector<1x3x1x8xf32>,
    %117 = vector.extract_strided_slice %72 {offsets = [0, 272], sizes = [3, 8], strides = [1, 1]} : vector<3x408xf32> to vector<3x8xf32>
    %c1_76 = arith.constant 1 : index
    %c0_77 = arith.constant 0 : index
    %c1_78 = arith.constant 1 : index
    %c0_79 = arith.constant 0 : index
    %118 = vector.load %arg2[%c1_76, %c0_77, %c1_78, %c0_79] : memref<2x3x10x8xf32, #tpu.memory_space<vmem>>, vector<1x3x1x8xf32>
    %119 = vector.shape_cast %118 : vector<1x3x1x8xf32> to vector<3x8xf32>
    %120 = vector.shape_cast %117 : vector<3x8xf32> to vector<1x3x1x8xf32>
    tpu.vector_store %arg2[%c1_76, %c0_77, %c1_78, %c0_79], %120 {strides = array<i32>} : memref<2x3x10x8xf32, #tpu.memory_space<vmem>>, vector<1x3x1x8xf32>,
    %121 = vector.extract_strided_slice %72 {offsets = [0, 288], sizes = [3, 8], strides = [1, 1]} : vector<3x408xf32> to vector<3x8xf32>
    %c1_80 = arith.constant 1 : index
    %c0_81 = arith.constant 0 : index
    %c2_82 = arith.constant 2 : index
    %c0_83 = arith.constant 0 : index
    %122 = vector.load %arg2[%c1_80, %c0_81, %c2_82, %c0_83] : memref<2x3x10x8xf32, #tpu.memory_space<vmem>>, vector<1x3x1x8xf32>
    %123 = vector.shape_cast %122 : vector<1x3x1x8xf32> to vector<3x8xf32>
    %124 = vector.shape_cast %121 : vector<3x8xf32> to vector<1x3x1x8xf32>
    tpu.vector_store %arg2[%c1_80, %c0_81, %c2_82, %c0_83], %124 {strides = array<i32>} : memref<2x3x10x8xf32, #tpu.memory_space<vmem>>, vector<1x3x1x8xf32>,
    %125 = vector.extract_strided_slice %72 {offsets = [0, 304], sizes = [3, 8], strides = [1, 1]} : vector<3x408xf32> to vector<3x8xf32>
    %c1_84 = arith.constant 1 : index
    %c0_85 = arith.constant 0 : index
    %c3_86 = arith.constant 3 : index
    %c0_87 = arith.constant 0 : index
    %126 = vector.load %arg2[%c1_84, %c0_85, %c3_86, %c0_87] : memref<2x3x10x8xf32, #tpu.memory_space<vmem>>, vector<1x3x1x8xf32>
    %127 = vector.shape_cast %126 : vector<1x3x1x8xf32> to vector<3x8xf32>
    %128 = vector.shape_cast %125 : vector<3x8xf32> to vector<1x3x1x8xf32>
    tpu.vector_store %arg2[%c1_84, %c0_85, %c3_86, %c0_87], %128 {strides = array<i32>} : memref<2x3x10x8xf32, #tpu.memory_space<vmem>>, vector<1x3x1x8xf32>,
    %129 = vector.extract_strided_slice %72 {offsets = [0, 320], sizes = [3, 8], strides = [1, 1]} : vector<3x408xf32> to vector<3x8xf32>
    %c1_88 = arith.constant 1 : index
    %c0_89 = arith.constant 0 : index
    %c4_90 = arith.constant 4 : index
    %c0_91 = arith.constant 0 : index
    %130 = vector.load %arg2[%c1_88, %c0_89, %c4_90, %c0_91] : memref<2x3x10x8xf32, #tpu.memory_space<vmem>>, vector<1x3x1x8xf32>
    %131 = vector.shape_cast %130 : vector<1x3x1x8xf32> to vector<3x8xf32>
    %132 = vector.shape_cast %129 : vector<3x8xf32> to vector<1x3x1x8xf32>
    tpu.vector_store %arg2[%c1_88, %c0_89, %c4_90, %c0_91], %132 {strides = array<i32>} : memref<2x3x10x8xf32, #tpu.memory_space<vmem>>, vector<1x3x1x8xf32>,
    %133 = vector.extract_strided_slice %72 {offsets = [0, 336], sizes = [3, 8], strides = [1, 1]} : vector<3x408xf32> to vector<3x8xf32>
    %c1_92 = arith.constant 1 : index
    %c0_93 = arith.constant 0 : index
    %c5_94 = arith.constant 5 : index
    %c0_95 = arith.constant 0 : index
    %134 = vector.load %arg2[%c1_92, %c0_93, %c5_94, %c0_95] : memref<2x3x10x8xf32, #tpu.memory_space<vmem>>, vector<1x3x1x8xf32>
    %135 = vector.shape_cast %134 : vector<1x3x1x8xf32> to vector<3x8xf32>
    %136 = vector.shape_cast %133 : vector<3x8xf32> to vector<1x3x1x8xf32>
    tpu.vector_store %arg2[%c1_92, %c0_93, %c5_94, %c0_95], %136 {strides = array<i32>} : memref<2x3x10x8xf32, #tpu.memory_space<vmem>>, vector<1x3x1x8xf32>,
    %137 = vector.extract_strided_slice %72 {offsets = [0, 352], sizes = [3, 8], strides = [1, 1]} : vector<3x408xf32> to vector<3x8xf32>
    %c1_96 = arith.constant 1 : index
    %c0_97 = arith.constant 0 : index
    %c6_98 = arith.constant 6 : index
    %c0_99 = arith.constant 0 : index
    %138 = vector.load %arg2[%c1_96, %c0_97, %c6_98, %c0_99] : memref<2x3x10x8xf32, #tpu.memory_space<vmem>>, vector<1x3x1x8xf32>
    %139 = vector.shape_cast %138 : vector<1x3x1x8xf32> to vector<3x8xf32>
    %140 = vector.shape_cast %137 : vector<3x8xf32> to vector<1x3x1x8xf32>
    tpu.vector_store %arg2[%c1_96, %c0_97, %c6_98, %c0_99], %140 {strides = array<i32>} : memref<2x3x10x8xf32, #tpu.memory_space<vmem>>, vector<1x3x1x8xf32>,
    %141 = vector.extract_strided_slice %72 {offsets = [0, 368], sizes = [3, 8], strides = [1, 1]} : vector<3x408xf32> to vector<3x8xf32>
    %c1_100 = arith.constant 1 : index
    %c0_101 = arith.constant 0 : index
    %c7_102 = arith.constant 7 : index
    %c0_103 = arith.constant 0 : index
    %142 = vector.load %arg2[%c1_100, %c0_101, %c7_102, %c0_103] : memref<2x3x10x8xf32, #tpu.memory_space<vmem>>, vector<1x3x1x8xf32>
    %143 = vector.shape_cast %142 : vector<1x3x1x8xf32> to vector<3x8xf32>
    %144 = vector.shape_cast %141 : vector<3x8xf32> to vector<1x3x1x8xf32>
    tpu.vector_store %arg2[%c1_100, %c0_101, %c7_102, %c0_103], %144 {strides = array<i32>} : memref<2x3x10x8xf32, #tpu.memory_space<vmem>>, vector<1x3x1x8xf32>,
    %145 = vector.extract_strided_slice %72 {offsets = [0, 384], sizes = [3, 8], strides = [1, 1]} : vector<3x408xf32> to vector<3x8xf32>
    %c1_104 = arith.constant 1 : index
    %c0_105 = arith.constant 0 : index
    %c8_106 = arith.constant 8 : index
    %c0_107 = arith.constant 0 : index
    %146 = vector.load %arg2[%c1_104, %c0_105, %c8_106, %c0_107] : memref<2x3x10x8xf32, #tpu.memory_space<vmem>>, vector<1x3x1x8xf32>
    %147 = vector.shape_cast %146 : vector<1x3x1x8xf32> to vector<3x8xf32>
    %148 = vector.shape_cast %145 : vector<3x8xf32> to vector<1x3x1x8xf32>
    tpu.vector_store %arg2[%c1_104, %c0_105, %c8_106, %c0_107], %148 {strides = array<i32>} : memref<2x3x10x8xf32, #tpu.memory_space<vmem>>, vector<1x3x1x8xf32>,
    %149 = vector.extract_strided_slice %72 {offsets = [0, 400], sizes = [3, 8], strides = [1, 1]} : vector<3x408xf32> to vector<3x8xf32>
    %c1_108 = arith.constant 1 : index
    %c0_109 = arith.constant 0 : index
    %c9_110 = arith.constant 9 : index
    %c0_111 = arith.constant 0 : index
    %150 = vector.load %arg2[%c1_108, %c0_109, %c9_110, %c0_111] : memref<2x3x10x8xf32, #tpu.memory_space<vmem>>, vector<1x3x1x8xf32>
    %151 = vector.shape_cast %150 : vector<1x3x1x8xf32> to vector<3x8xf32>
    %152 = vector.shape_cast %149 : vector<3x8xf32> to vector<1x3x1x8xf32>
    tpu.vector_store %arg2[%c1_108, %c0_109, %c9_110, %c0_111], %152 {strides = array<i32>} : memref<2x3x10x8xf32, #tpu.memory_space<vmem>>, vector<1x3x1x8xf32>,
    return
  }
}

</mosaic_0001>

<bundles_post_ra>
// kernel: raki_forward.1
= control target key start
LH: loop header
LB: loop body
LE: loop exit
PB: predicated region body
PF: predicated region fallthrough
CT: control target
= control target key end

     0   :  { %v4142_v2 = vmov 0.0   ;;  %s4143_s13 = smov 124   ;;  %s4145_s14 = smov 108   ;;  %vm51_vm0 = vcmask 1043456   ;;  %vm34_vm1 = vcmask 1014784   ;;  %vm38_vm2 = vcmask 31744   ;;  %s5003_s0 = inlined_call_operand.vmem [shape: f32[2,4,256], index: 0, kind: input, shape index: {}]   ;;  %s5004_s1 = inlined_call_operand.vmem [shape: f32[376,32], index: 1, kind: input, shape index: {}]   ;;  %s5005_s2 = inlined_call_operand.vmem [shape: f32[2,3,10,8], index: 2, kind: output, shape index: {}]  }
   0x1   :  { %v4174_v0 = vld [vmem:[%s5003_s0] sm:$0xff]  ;;  %v4179_v1 = vld [vmem:[%s5003_s0 + $0x8] sm:$0xff]  ;;  %213 = vmatprep.mubr.f32.mxu1 %v4142_v2  ;;  %124 = vmatprep.mubr.f32.mxu0 %v4142_v2  ;;  %s4144_s0 = smov 112   ;;  %s4146_s15 = smov 96   ;;  %vm448_vm3 = vcmask 916480   ;;  %v24_v18 = vld [vmem:[%s5004_s1 + $0x30] sm:$0xff] }
   0x2   :  { %26 = vrot.lane.b32.xlu1 %v4174_v0, %s4143_s13  ;;  %v4187_v3 = vcombine.high %v4174_v0, %v4174_v0  ;;  %v4191_v4 = vcombine.high %v4179_v1, %v4179_v1  ;;  %s4147_s16 = smov 92   ;;  %s4148_s17 = smov 80   ;;  %v22_v9 = vld [vmem:[%s5004_s1 + $0x20] sm:$0xff]  ;;  %v23_v14 = vld [vmem:[%s5004_s1 + $0x28] sm:$0xff]  ;;  %v25_v19 = vld [vmem:[%s5004_s1 + $0x38] sm:$0xff]  ;;  %vm678_vm4 = vcmask 883712  }
   0x3   :  { %s4149_s18 = smov 76   ;;  %s4150_s19 = smov 64   ;;  %v18_v22 = vld [vmem:[%s5004_s1] sm:$0xff]  ;;  %v19_v27 = vld [vmem:[%s5004_s1 + $0x8] sm:$0xff]  ;;  %v20_v29 = vld [vmem:[%s5004_s1 + $0x10] sm:$0xff]  ;;  %vm908_vm5 = vcmask 785408  }
   0x4   :  { %28 = vrot.lane.b32.xlu0 %v4187_v3, %s4143_s13  ;;  %s4151_s20 = smov 60   ;;  %v21_v30 = vld [vmem:[%s5004_s1 + $0x18] sm:$0xff]  ;;  %v436_v33 = vld [vmem:[%s5004_s1 + $0x40] sm:$0xff]  ;;  %v437_v38 = vld [vmem:[%s5004_s1 + $0x48] sm:$0xff]  ;;  %vm1138_vm6 = vcmask 752640   ;;  %vm1368_vm7 = vcmask 654336  }
   0x5   :  { %v438_v40 = vld [vmem:[%s5004_s1 + $0x50] sm:$0xff]  ;;  %v439_v41 = vld [vmem:[%s5004_s1 + $0x58] sm:$0xff]  ;;  %v666_v44 = vld [vmem:[%s5004_s1 + $0x60] sm:$0xff]  ;;  %vm1598_vm8 = vcmask 621568   ;;  %vm1828_vm9 = vcmask 523264   ;;  %vm2058_vm10 = vcmask 490496  }
   0x6   :  { %32 = vrot.lane.b32.xlu1 %v4191_v4, %s4143_s13  ;;  %v667_v49 = vld [vmem:[%s5004_s1 + $0x68] sm:$0xff]  ;;  %v668_v51 = vld [vmem:[%s5004_s1 + $0x70] sm:$0xff]  ;;  %v669_v52 = vld [vmem:[%s5004_s1 + $0x78] sm:$0xff]  ;;  %vm2293_vm11 = vcmask 261120   ;;  %vm2464_vm12 = vcmask 64512   ;;  %vm3442_vm13 = vcmask 57344  }
   0x7   :  { %v896_v55 = vld [vmem:[%s5004_s1 + $0x80] sm:$0xff]  ;;  %v897_v60 = vld [vmem:[%s5004_s1 + $0x88] sm:$0xff]  ;;  %v898_v62 = vld [vmem:[%s5004_s1 + $0x90] sm:$0xff]  ;;  %s4153_s22 = smov 32   ;;  %s4154_s23 = smov 48  }
   0x8   :  { %30 = vrot.lane.b32.xlu0 %v4179_v1, %s4143_s13  ;;  %v899_v63 = vld [vmem:[%s5004_s1 + $0x98] sm:$0xff] }
   0xa   :  { %444 = vrot.lane.b32.xlu1 %v4179_v1, %s4144_s0 }
   0xc   :  { %442 = vrot.lane.b32.xlu0 %v4187_v3, %s4144_s0 }
   0xe   :  { %446 = vrot.lane.b32.xlu1 %v4191_v4, %s4144_s0 }
  0x10   :  { %440 = vrot.lane.b32.xlu0 %v4174_v0, %s4144_s0 }
  0x12   :  { %674 = vrot.lane.b32.xlu1 %v4179_v1, %s4145_s14 }
  0x14   :  { %672 = vrot.lane.b32.xlu0 %v4187_v3, %s4145_s14 }
  0x16   :  { %676 = vrot.lane.b32.xlu1 %v4191_v4, %s4145_s14 }
  0x18   :  { %670 = vrot.lane.b32.xlu0 %v4174_v0, %s4145_s14 }
  0x1a   :  { %904 = vrot.lane.b32.xlu1 %v4179_v1, %s4146_s15 }
  0x1c   :  { %902 = vrot.lane.b32.xlu0 %v4187_v3, %s4146_s15 }
  0x1e   :  { %906 = vrot.lane.b32.xlu1 %v4191_v4, %s4146_s15 }
  0x20   :  { %900 = vrot.lane.b32.xlu0 %v4174_v0, %s4146_s15 }
  0x22   :  { %1134 = vrot.lane.b32.xlu1 %v4179_v1, %s4147_s16 }
  0x24   :  { %1132 = vrot.lane.b32.xlu0 %v4187_v3, %s4147_s16 }
  0x26   :  { %1136 = vrot.lane.b32.xlu1 %v4191_v4, %s4147_s16 }
  0x28   :  { %1130 = vrot.lane.b32.xlu0 %v4174_v0, %s4147_s16 }
  0x2a   :  { %1364 = vrot.lane.b32.xlu1 %v4179_v1, %s4148_s17 }
  0x2c   :  { %1362 = vrot.lane.b32.xlu0 %v4187_v3, %s4148_s17 }
  0x2e   :  { %1366 = vrot.lane.b32.xlu1 %v4191_v4, %s4148_s17 }
  0x30   :  { %1360 = vrot.lane.b32.xlu0 %v4174_v0, %s4148_s17 }
  0x32   :  { %1594 = vrot.lane.b32.xlu1 %v4179_v1, %s4149_s18 }
  0x34   :  { %1592 = vrot.lane.b32.xlu0 %v4187_v3, %s4149_s18 }
  0x36   :  { %1596 = vrot.lane.b32.xlu1 %v4191_v4, %s4149_s18 }
  0x38   :  { %1590 = vrot.lane.b32.xlu0 %v4174_v0, %s4149_s18 }
  0x3a   :  { %1824 = vrot.lane.b32.xlu1 %v4179_v1, %s4150_s19 }
  0x3c   :  { %1822 = vrot.lane.b32.xlu0 %v4187_v3, %s4150_s19 }
  0x3e   :  { %1826 = vrot.lane.b32.xlu1 %v4191_v4, %s4150_s19 }
  0x40   :  { %1820 = vrot.lane.b32.xlu0 %v4174_v0, %s4150_s19 }
  0x42   :  { %2054 = vrot.lane.b32.xlu1 %v4179_v1, %s4151_s20 }
  0x44   :  { %2052 = vrot.lane.b32.xlu0 %v4187_v3, %s4151_s20 }
  0x46   :  { %2056 = vrot.lane.b32.xlu1 %v4191_v4, %s4151_s20 }
  0x48   :  { %2050 = vrot.lane.b32.xlu0 %v4174_v0, %s4151_s20 }
  0x74   :  { %v27_v5 = vpop.permute.xlu1 %26 }
  0x76   :  { %v29_v6 = vpop.permute.xlu0 %28 }
  0x77   :  { %v35_v12 = vsel %vm34_vm1, %v27_v5, %v29_v6 }
  0x78   :  { %v33_v7 = vpop.permute.xlu1 %32 }
  0x79   :  { %3788 = vmatprep.subr.msk.mxu1 %vm51_vm0, %v33_v7 }
  0x7a   :  { %v31_v8 = vpop.permute.xlu0 %30 }
  0x7b   :  { %v36_v10 = vsel %vm34_vm1, %v29_v6, %v31_v8  ;;  %v37_v11 = vsel %vm34_vm1, %v31_v8, %v33_v7  ;;  %v1127_v8 = vld [vmem:[%s5004_s1 + $0xa8] sm:$0xff] }
  0x7c   :  { %3782 = vmatprep.subr.msk.mxu0 %vm51_vm0, %v36_v10  ;;  %3789 = vmatpush1.msk.msra.mxu1 %vm51_vm0, %v37_v11  ;;  %v445_v13 = vpop.permute.xlu1 %444  ;;  %v1128_v10 = vld [vmem:[%s5004_s1 + $0xb0] sm:$0xff]  ;;  %v1129_v11 = vld [vmem:[%s5004_s1 + $0xb8] sm:$0xff] }
  0x7d   :  { %3783 = vmatpush1.msk.msra.mxu0 %vm51_vm0, %v35_v12  ;;  %3790 = vmatmul.mubr.msk.f32.vlgmr.msra.gmra.mrb[0].mxu1 %vm38_vm2, %v22_v9 }
  0x7e   :  { %3784 = vmatmul.mubr.msk.f32.vlgmr.msra.gmra.mrb[0].mxu0 %vm38_vm2, %v22_v9  ;;  %219 = vmatprep.mubr.f32.mxu1 %v4142_v2  ;;  %v443_v15 = vpop.permute.xlu0 %442 }
  0x7f   :  { %130 = vmatprep.mubr.f32.mxu0 %v4142_v2  ;;  %3800 = vmatprep.subr.msk.mxu1 %vm51_vm0, %v4191_v4  ;;  %v450_v17 = vsel %vm448_vm3, %v443_v15, %v445_v13 }
  0x80   :  { %3801 = vmatpush1.msk.msra.mxu1 %vm51_vm0, %v4179_v1  ;;  %v447_v16 = vpop.permute.xlu1 %446  ;;  %3794 = vmatprep.subr.msk.mxu0 %vm51_vm0, %v4187_v3  ;;  %v1126_v3 = vld [vmem:[%s5004_s1 + $0xa0] sm:$0xff] }
  0x81   :  { %3791 = vmatmul.mubr.msk.f32.gmra.mrb[2].mxu1 %vm38_vm2, %v23_v14  ;;  %3795 = vmatpush1.msk.msra.mxu0 %vm51_vm0, %v4174_v0  ;;  %v451_v23 = vsel %vm448_vm3, %v445_v13, %v447_v16 }
  0x82   :  { %3785 = vmatmul.mubr.msk.f32.gmra.mrb[2].mxu0 %vm38_vm2, %v23_v14  ;;  %225 = vmatprep.mubr.f32.mxu1 %v4142_v2  ;;  %v441_v21 = vpop.permute.xlu0 %440  ;;  %v1356_v14 = vld [vmem:[%s5004_s1 + $0xc0] sm:$0xff] }
  0x83   :  { %136 = vmatprep.mubr.f32.mxu0 %v4142_v2  ;;  %3812 = vmatprep.subr.msk.mxu1 %vm51_vm0, %v447_v16  ;;  %v449_v25 = vsel %vm448_vm3, %v441_v21, %v443_v15  ;;  %v1358_v21 = vld [vmem:[%s5004_s1 + $0xd0] sm:$0xff] }
  0x84   :  { %3806 = vmatprep.subr.msk.mxu0 %vm51_vm0, %v450_v17  ;;  %v675_v20 = vpop.permute.xlu1 %674 }
  0x85   :  { %3792 = vmatmul.mubr.msk.f32.gmra.mrb[4].mxu1 %vm38_vm2, %v24_v18 }
  0x86   :  { %3786 = vmatmul.mubr.msk.f32.gmra.mrb[4].mxu0 %vm38_vm2, %v24_v18  ;;  %231 = vmatprep.mubr.f32.mxu1 %v4142_v2  ;;  %v673_v24 = vpop.permute.xlu0 %672 }
  0x87   :  { %142 = vmatprep.mubr.f32.mxu0 %v4142_v2  ;;  %v680_v28 = vsel %vm678_vm4, %v673_v24, %v675_v20 }
  0x88   :  { %v677_v26 = vpop.permute.xlu1 %676 }
  0x89   :  { %3793 = vmatmul.mubr.msk.f32.gmra.mrb[6].mxu1 %vm38_vm2, %v25_v19  ;;  %v681_v34 = vsel %vm678_vm4, %v675_v20, %v677_v26 }
  0x8a   :  { %3787 = vmatmul.mubr.msk.f32.gmra.mrb[6].mxu0 %vm38_vm2, %v25_v19  ;;  %411 = vmatprep.mubr.f32.mxu1 %v4142_v2  ;;  %v671_v32 = vpop.permute.xlu0 %670  ;;  %v1357_v19 = vld [vmem:[%s5004_s1 + $0xc8] sm:$0xff] }
  0x8b   :  { %322 = vmatprep.mubr.f32.mxu0 %v4142_v2  ;;  %v679_v36 = vsel %vm678_vm4, %v671_v32, %v673_v24  ;;  %v1588_v32 = vld [vmem:[%s5004_s1 + $0xf0] sm:$0xff] }
  0x8c   :  { %v905_v31 = vpop.permute.xlu1 %904 }
  0x8d   :  { %3802 = vmatmul.mubr.msk.f32.vlgmr.msra.gmra.mrb[0].mxu1 %vm38_vm2, %v18_v22 }
  0x8e   :  { %3796 = vmatmul.mubr.msk.f32.vlgmr.msra.gmra.mrb[0].mxu0 %vm38_vm2, %v18_v22  ;;  %3813 = vmatpush1.msk.msra.mxu1 %vm51_vm0, %v451_v23  ;;  %v903_v35 = vpop.permute.xlu0 %902  ;;  %v1359_v22 = vld [vmem:[%s5004_s1 + $0xd8] sm:$0xff] }
  0x8f   :  { %417 = vmatprep.mubr.f32.mxu1 %v4142_v2  ;;  %328 = vmatprep.mubr.f32.mxu0 %v4142_v2  ;;  %v910_v39 = vsel %vm908_vm5, %v903_v35, %v905_v31 }
  0x90   :  { %3807 = vmatpush1.msk.msra.mxu0 %vm51_vm0, %v449_v25  ;;  %3824 = vmatprep.subr.msk.mxu1 %vm51_vm0, %v677_v26  ;;  %v907_v37 = vpop.permute.xlu1 %906  ;;  %v1586_v25 = vld [vmem:[%s5004_s1 + $0xe0] sm:$0xff] }
  0x91   :  { %3803 = vmatmul.mubr.msk.f32.gmra.mrb[2].mxu1 %vm38_vm2, %v19_v27  ;;  %3818 = vmatprep.subr.msk.mxu0 %vm51_vm0, %v680_v28  ;;  %v911_v45 = vsel %vm908_vm5, %v905_v31, %v907_v37 }
  0x92   :  { %3797 = vmatmul.mubr.msk.f32.gmra.mrb[2].mxu0 %vm38_vm2, %v19_v27  ;;  %423 = vmatprep.mubr.f32.mxu1 %v4142_v2  ;;  %v901_v43 = vpop.permute.xlu0 %900 }
  0x93   :  { %334 = vmatprep.mubr.f32.mxu0 %v4142_v2  ;;  %v909_v47 = vsel %vm908_vm5, %v901_v43, %v903_v35  ;;  %v2048_v43 = vld [vmem:[%s5004_s1 + $0x130] sm:$0xff] }
  0x94   :  { %v1135_v42 = vpop.permute.xlu1 %1134 }
  0x95   :  { %3804 = vmatmul.mubr.msk.f32.gmra.mrb[4].mxu1 %vm38_vm2, %v20_v29 }
  0x96   :  { %3798 = vmatmul.mubr.msk.f32.gmra.mrb[4].mxu0 %vm38_vm2, %v20_v29  ;;  %429 = vmatprep.mubr.f32.mxu1 %v4142_v2  ;;  %v1133_v46 = vpop.permute.xlu0 %1132 }
  0x97   :  { %340 = vmatprep.mubr.f32.mxu0 %v4142_v2  ;;  %v1140_v50 = vsel %vm1138_vm6, %v1133_v46, %v1135_v42 }
  0x98   :  { %v1137_v48 = vpop.permute.xlu1 %1136 }
  0x99   :  { %3805 = vmatmul.mubr.msk.f32.gmra.mrb[6].mxu1 %vm38_vm2, %v21_v30  ;;  %v1141_v56 = vsel %vm1138_vm6, %v1135_v42, %v1137_v48  ;;  %v2047_v42 = vld [vmem:[%s5004_s1 + $0x128] sm:$0xff] }
  0x9a   :  { %3799 = vmatmul.mubr.msk.f32.gmra.mrb[6].mxu0 %vm38_vm2, %v21_v30  ;;  %625 = vmatprep.mubr.f32.mxu1 %v4142_v2  ;;  %v1131_v54 = vpop.permute.xlu0 %1130  ;;  %v1587_v30 = vld [vmem:[%s5004_s1 + $0xe8] sm:$0xff] }
  0x9b   :  { %536 = vmatprep.mubr.f32.mxu0 %v4142_v2  ;;  %v1139_v58 = vsel %vm1138_vm6, %v1131_v54, %v1133_v46 }
  0x9c   :  { %v1365_v53 = vpop.permute.xlu1 %1364 }
  0x9d   :  { %3814 = vmatmul.mubr.msk.f32.vlgmr.msra.gmra.mrb[0].mxu1 %vm38_vm2, %v436_v33 }
  0x9e   :  { %3808 = vmatmul.mubr.msk.f32.vlgmr.msra.gmra.mrb[0].mxu0 %vm38_vm2, %v436_v33  ;;  %3825 = vmatpush1.msk.msra.mxu1 %vm51_vm0, %v681_v34  ;;  %v1363_v57 = vpop.permute.xlu0 %1362  ;;  %v1589_v33 = vld [vmem:[%s5004_s1 + $0xf8] sm:$0xff]  ;;  %v1816_v34 = vld [vmem:[%s5004_s1 + $0x100] sm:$0xff] }
  0x9f   :  { %631 = vmatprep.mubr.f32.mxu1 %v4142_v2  ;;  %542 = vmatprep.mubr.f32.mxu0 %v4142_v2  ;;  %v1370_v61 = vsel %vm1368_vm7, %v1363_v57, %v1365_v53 }
  0xa0   :  { %3819 = vmatpush1.msk.msra.mxu0 %vm51_vm0, %v679_v36  ;;  %3836 = vmatprep.subr.msk.mxu1 %vm51_vm0, %v907_v37  ;;  %v1367_v59 = vpop.permute.xlu1 %1366 }
  0xa1   :  { %3815 = vmatmul.mubr.msk.f32.gmra.mrb[2].mxu1 %vm38_vm2, %v437_v38  ;;  %3830 = vmatprep.subr.msk.mxu0 %vm51_vm0, %v910_v39  ;;  %v1371_v4 = vsel %vm1368_vm7, %v1365_v53, %v1367_v59  ;;  %v1818_v39 = vld [vmem:[%s5004_s1 + $0x110] sm:$0xff] }
  0xa2   :  { %3809 = vmatmul.mubr.msk.f32.gmra.mrb[2].mxu0 %vm38_vm2, %v437_v38  ;;  %637 = vmatprep.mubr.f32.mxu1 %v4142_v2  ;;  %v1361_v1 = vpop.permute.xlu0 %1360  ;;  %v1817_v38 = vld [vmem:[%s5004_s1 + $0x108] sm:$0xff] }
  0xa3   :  { %548 = vmatprep.mubr.f32.mxu0 %v4142_v2  ;;  %v1369_v6 = vsel %vm1368_vm7, %v1361_v1, %v1363_v57 }
  0xa4   :  { %v1595_v0 = vpop.permute.xlu1 %1594 }
  0xa5   :  { %3816 = vmatmul.mubr.msk.f32.gmra.mrb[4].mxu1 %vm38_vm2, %v438_v40 }
  0xa6   :  { %3810 = vmatmul.mubr.msk.f32.gmra.mrb[4].mxu0 %vm38_vm2, %v438_v40  ;;  %643 = vmatprep.mubr.f32.mxu1 %v4142_v2  ;;  %v1593_v5 = vpop.permute.xlu0 %1592  ;;  %v1819_v40 = vld [vmem:[%s5004_s1 + $0x118] sm:$0xff] }
  0xa7   :  { %554 = vmatprep.mubr.f32.mxu0 %v4142_v2  ;;  %v1600_v9 = vsel %vm1598_vm8, %v1593_v5, %v1595_v0 }
  0xa8   :  { %v1597_v7 = vpop.permute.xlu1 %1596 }
  0xa9   :  { %3817 = vmatmul.mubr.msk.f32.gmra.mrb[6].mxu1 %vm38_vm2, %v439_v41  ;;  %v1601_v15 = vsel %vm1598_vm8, %v1595_v0, %v1597_v7 }
  0xaa   :  { %3811 = vmatmul.mubr.msk.f32.gmra.mrb[6].mxu0 %vm38_vm2, %v439_v41  ;;  %855 = vmatprep.mubr.f32.mxu1 %v4142_v2  ;;  %v1591_v13 = vpop.permute.xlu0 %1590  ;;  %v2046_v41 = vld [vmem:[%s5004_s1 + $0x120] sm:$0xff] }
  0xab   :  { %766 = vmatprep.mubr.f32.mxu0 %v4142_v2  ;;  %v1599_v17 = vsel %vm1598_vm8, %v1591_v13, %v1593_v5 }
  0xac   :  { %v1825_v12 = vpop.permute.xlu1 %1824 }
  0xad   :  { %3826 = vmatmul.mubr.msk.f32.vlgmr.msra.gmra.mrb[0].mxu1 %vm38_vm2, %v666_v44 }
  0xae   :  { %3820 = vmatmul.mubr.msk.f32.vlgmr.msra.gmra.mrb[0].mxu0 %vm38_vm2, %v666_v44  ;;  %3837 = vmatpush1.msk.msra.mxu1 %vm51_vm0, %v911_v45  ;;  %v1823_v16 = vpop.permute.xlu0 %1822  ;;  %v2049_v44 = vld [vmem:[%s5004_s1 + $0x138] sm:$0xff] }
  0xaf   :  { %861 = vmatprep.mubr.f32.mxu1 %v4142_v2  ;;  %772 = vmatprep.mubr.f32.mxu0 %v4142_v2  ;;  %v1830_v20 = vsel %vm1828_vm9, %v1823_v16, %v1825_v12 }
  0xb0   :  { %3831 = vmatpush1.msk.msra.mxu0 %vm51_vm0, %v909_v47  ;;  %3848 = vmatprep.subr.msk.mxu1 %vm51_vm0, %v1137_v48  ;;  %v1827_v18 = vpop.permute.xlu1 %1826 }
  0xb1   :  { %3827 = vmatmul.mubr.msk.f32.gmra.mrb[2].mxu1 %vm38_vm2, %v667_v49  ;;  %3842 = vmatprep.subr.msk.mxu0 %vm51_vm0, %v1140_v50  ;;  %v1831_v26 = vsel %vm1828_vm9, %v1825_v12, %v1827_v18 }
  0xb2   :  { %3821 = vmatmul.mubr.msk.f32.gmra.mrb[2].mxu0 %vm38_vm2, %v667_v49  ;;  %867 = vmatprep.mubr.f32.mxu1 %v4142_v2  ;;  %v1821_v24 = vpop.permute.xlu0 %1820 }
  0xb3   :  { %778 = vmatprep.mubr.f32.mxu0 %v4142_v2  ;;  %v1829_v28 = vsel %vm1828_vm9, %v1821_v24, %v1823_v16 }
  0xb4   :  { %v2055_v23 = vpop.permute.xlu1 %2054 }
  0xb5   :  { %3828 = vmatmul.mubr.msk.f32.gmra.mrb[4].mxu1 %vm38_vm2, %v668_v51 }
  0xb6   :  { %3822 = vmatmul.mubr.msk.f32.gmra.mrb[4].mxu0 %vm38_vm2, %v668_v51  ;;  %873 = vmatprep.mubr.f32.mxu1 %v4142_v2  ;;  %v2053_v27 = vpop.permute.xlu0 %2052 }
  0xb7   :  { %784 = vmatprep.mubr.f32.mxu0 %v4142_v2  ;;  %v2060_v31 = vsel %vm2058_vm10, %v2053_v27, %v2055_v23 }
  0xb8   :  { %v2057_v29 = vpop.permute.xlu1 %2056 }
  0xb9   :  { %3829 = vmatmul.mubr.msk.f32.gmra.mrb[6].mxu1 %vm38_vm2, %v669_v52  ;;  %v2061_v36 = vsel %vm2058_vm10, %v2055_v23, %v2057_v29 }
  0xba   :  { %3823 = vmatmul.mubr.msk.f32.gmra.mrb[6].mxu0 %vm38_vm2, %v669_v52  ;;  %1085 = vmatprep.mubr.f32.mxu1 %v4142_v2  ;;  %v2051_v35 = vpop.permute.xlu0 %2050 }
  0xbb   :  { %996 = vmatprep.mubr.f32.mxu0 %v4142_v2  ;;  %v2059_v37 = vsel %vm2058_vm10, %v2051_v35, %v2053_v27  ;;  %v2444_v35 = vld [vmem:[%s5004_s1 + $0x150] sm:$0x7] }
  0xbd   :  { %3838 = vmatmul.mubr.msk.f32.vlgmr.msra.gmra.mrb[0].mxu1 %vm38_vm2, %v896_v55 }
  0xbe   :  { %3832 = vmatmul.mubr.msk.f32.vlgmr.msra.gmra.mrb[0].mxu0 %vm38_vm2, %v896_v55  ;;  %3849 = vmatpush1.msk.msra.mxu1 %vm51_vm0, %v1141_v56 }
  0xbf   :  { %1091 = vmatprep.mubr.f32.mxu1 %v4142_v2  ;;  %1002 = vmatprep.mubr.f32.mxu0 %v4142_v2 }
  0xc0   :  { %3843 = vmatpush1.msk.msra.mxu0 %vm51_vm0, %v1139_v58  ;;  %3860 = vmatprep.subr.msk.mxu1 %vm51_vm0, %v1367_v59 }
  0xc1   :  { %3839 = vmatmul.mubr.msk.f32.gmra.mrb[2].mxu1 %vm38_vm2, %v897_v60  ;;  %3854 = vmatprep.subr.msk.mxu0 %vm51_vm0, %v1370_v61 }
  0xc2   :  { %3833 = vmatmul.mubr.msk.f32.gmra.mrb[2].mxu0 %vm38_vm2, %v897_v60  ;;  %1097 = vmatprep.mubr.f32.mxu1 %v4142_v2 }
  0xc3   :  { %1008 = vmatprep.mubr.f32.mxu0 %v4142_v2 }
  0xc5   :  { %3840 = vmatmul.mubr.msk.f32.gmra.mrb[4].mxu1 %vm38_vm2, %v898_v62 }
  0xc6   :  { %3834 = vmatmul.mubr.msk.f32.gmra.mrb[4].mxu0 %vm38_vm2, %v898_v62  ;;  %1103 = vmatprep.mubr.f32.mxu1 %v4142_v2 }
  0xc7   :  { %1014 = vmatprep.mubr.f32.mxu0 %v4142_v2 }
  0xc9   :  { %3841 = vmatmul.mubr.msk.f32.gmra.mrb[6].mxu1 %vm38_vm2, %v899_v63 }
  0xca   :  { %3835 = vmatmul.mubr.msk.f32.gmra.mrb[6].mxu0 %vm38_vm2, %v899_v63  ;;  %1315 = vmatprep.mubr.f32.mxu1 %v4142_v2 }
  0xcb   :  { %1226 = vmatprep.mubr.f32.mxu0 %v4142_v2 }
  0xcd   :  { %3850 = vmatmul.mubr.msk.f32.vlgmr.msra.gmra.mrb[0].mxu1 %vm38_vm2, %v1126_v3 }
  0xce   :  { %3844 = vmatmul.mubr.msk.f32.vlgmr.msra.gmra.mrb[0].mxu0 %vm38_vm2, %v1126_v3  ;;  %3861 = vmatpush1.msk.msra.mxu1 %vm51_vm0, %v1371_v4 }
  0xcf   :  { %1321 = vmatprep.mubr.f32.mxu1 %v4142_v2  ;;  %1232 = vmatprep.mubr.f32.mxu0 %v4142_v2 }
  0xd0   :  { %3855 = vmatpush1.msk.msra.mxu0 %vm51_vm0, %v1369_v6  ;;  %3872 = vmatprep.subr.msk.mxu1 %vm51_vm0, %v1597_v7 }
  0xd1   :  { %3851 = vmatmul.mubr.msk.f32.gmra.mrb[2].mxu1 %vm38_vm2, %v1127_v8  ;;  %3866 = vmatprep.subr.msk.mxu0 %vm51_vm0, %v1600_v9 }
  0xd2   :  { %3845 = vmatmul.mubr.msk.f32.gmra.mrb[2].mxu0 %vm38_vm2, %v1127_v8  ;;  %1327 = vmatprep.mubr.f32.mxu1 %v4142_v2 }
  0xd3   :  { %1238 = vmatprep.mubr.f32.mxu0 %v4142_v2 }
  0xd5   :  { %3852 = vmatmul.mubr.msk.f32.gmra.mrb[4].mxu1 %vm38_vm2, %v1128_v10 }
  0xd6   :  { %3846 = vmatmul.mubr.msk.f32.gmra.mrb[4].mxu0 %vm38_vm2, %v1128_v10  ;;  %1333 = vmatprep.mubr.f32.mxu1 %v4142_v2 }
  0xd7   :  { %1244 = vmatprep.mubr.f32.mxu0 %v4142_v2 }
  0xd9   :  { %3853 = vmatmul.mubr.msk.f32.gmra.mrb[6].mxu1 %vm38_vm2, %v1129_v11 }
  0xda   :  { %3847 = vmatmul.mubr.msk.f32.gmra.mrb[6].mxu0 %vm38_vm2, %v1129_v11  ;;  %1545 = vmatprep.mubr.f32.mxu1 %v4142_v2 }
  0xdb   :  { %1456 = vmatprep.mubr.f32.mxu0 %v4142_v2 }
  0xdd   :  { %3862 = vmatmul.mubr.msk.f32.vlgmr.msra.gmra.mrb[0].mxu1 %vm38_vm2, %v1356_v14 }
  0xde   :  { %3856 = vmatmul.mubr.msk.f32.vlgmr.msra.gmra.mrb[0].mxu0 %vm38_vm2, %v1356_v14  ;;  %3873 = vmatpush1.msk.msra.mxu1 %vm51_vm0, %v1601_v15 }
  0xdf   :  { %1551 = vmatprep.mubr.f32.mxu1 %v4142_v2  ;;  %1462 = vmatprep.mubr.f32.mxu0 %v4142_v2 }
  0xe0   :  { %3867 = vmatpush1.msk.msra.mxu0 %vm51_vm0, %v1599_v17  ;;  %3884 = vmatprep.subr.msk.mxu1 %vm51_vm0, %v1827_v18 }
  0xe1   :  { %3863 = vmatmul.mubr.msk.f32.gmra.mrb[2].mxu1 %vm38_vm2, %v1357_v19  ;;  %3878 = vmatprep.subr.msk.mxu0 %vm51_vm0, %v1830_v20 }
  0xe2   :  { %3857 = vmatmul.mubr.msk.f32.gmra.mrb[2].mxu0 %vm38_vm2, %v1357_v19  ;;  %1557 = vmatprep.mubr.f32.mxu1 %v4142_v2 }
  0xe3   :  { %1468 = vmatprep.mubr.f32.mxu0 %v4142_v2 }
  0xe5   :  { %3864 = vmatmul.mubr.msk.f32.gmra.mrb[4].mxu1 %vm38_vm2, %v1358_v21 }
  0xe6   :  { %3858 = vmatmul.mubr.msk.f32.gmra.mrb[4].mxu0 %vm38_vm2, %v1358_v21  ;;  %1563 = vmatprep.mubr.f32.mxu1 %v4142_v2 }
  0xe7   :  { %1474 = vmatprep.mubr.f32.mxu0 %v4142_v2 }
  0xe9   :  { %3865 = vmatmul.mubr.msk.f32.gmra.mrb[6].mxu1 %vm38_vm2, %v1359_v22 }
  0xea   :  { %3859 = vmatmul.mubr.msk.f32.gmra.mrb[6].mxu0 %vm38_vm2, %v1359_v22  ;;  %1775 = vmatprep.mubr.f32.mxu1 %v4142_v2  ;;  %v2292_v22 = vld [vmem:[%s5004_s1 + $0x140] sm:$0xff] }
  0xeb   :  { %1686 = vmatprep.mubr.f32.mxu0 %v4142_v2 }
  0xed   :  { %3874 = vmatmul.mubr.msk.f32.vlgmr.msra.gmra.mrb[0].mxu1 %vm38_vm2, %v1586_v25 }
  0xee   :  { %3868 = vmatmul.mubr.msk.f32.vlgmr.msra.gmra.mrb[0].mxu0 %vm38_vm2, %v1586_v25  ;;  %3885 = vmatpush1.msk.msra.mxu1 %vm51_vm0, %v1831_v26 }
  0xef   :  { %1781 = vmatprep.mubr.f32.mxu1 %v4142_v2  ;;  %1692 = vmatprep.mubr.f32.mxu0 %v4142_v2 }
  0xf0   :  { %3879 = vmatpush1.msk.msra.mxu0 %vm51_vm0, %v1829_v28  ;;  %3896 = vmatprep.subr.msk.mxu1 %vm51_vm0, %v2057_v29 }
  0xf1   :  { %3875 = vmatmul.mubr.msk.f32.gmra.mrb[2].mxu1 %vm38_vm2, %v1587_v30  ;;  %3890 = vmatprep.subr.msk.mxu0 %vm51_vm0, %v2060_v31 }
  0xf2   :  { %3869 = vmatmul.mubr.msk.f32.gmra.mrb[2].mxu0 %vm38_vm2, %v1587_v30  ;;  %1787 = vmatprep.mubr.f32.mxu1 %v4142_v2 }
  0xf3   :  { %1698 = vmatprep.mubr.f32.mxu0 %v4142_v2 }
  0xf5   :  { %3876 = vmatmul.mubr.msk.f32.gmra.mrb[4].mxu1 %vm38_vm2, %v1588_v32 }
  0xf6   :  { %3870 = vmatmul.mubr.msk.f32.gmra.mrb[4].mxu0 %vm38_vm2, %v1588_v32  ;;  %1793 = vmatprep.mubr.f32.mxu1 %v4142_v2 }
  0xf7   :  { %1704 = vmatprep.mubr.f32.mxu0 %v4142_v2 }
  0xf9   :  { %3877 = vmatmul.mubr.msk.f32.gmra.mrb[6].mxu1 %vm38_vm2, %v1589_v33 }
  0xfa   :  { %3871 = vmatmul.mubr.msk.f32.gmra.mrb[6].mxu0 %vm38_vm2, %v1589_v33  ;;  %2005 = vmatprep.mubr.f32.mxu1 %v4142_v2 }
  0xfb   :  { %1916 = vmatprep.mubr.f32.mxu0 %v4142_v2 }
  0xfd   :  { %3886 = vmatmul.mubr.msk.f32.vlgmr.msra.gmra.mrb[0].mxu1 %vm38_vm2, %v1816_v34 }
  0xfe   :  { %3880 = vmatmul.mubr.msk.f32.vlgmr.msra.gmra.mrb[0].mxu0 %vm38_vm2, %v1816_v34  ;;  %3897 = vmatpush1.msk.msra.mxu1 %vm51_vm0, %v2061_v36 }
  0xff   :  { %2011 = vmatprep.mubr.f32.mxu1 %v4142_v2  ;;  %1922 = vmatprep.mubr.f32.mxu0 %v4142_v2 }
 0x100   :  { %3891 = vmatpush1.msk.msra.mxu0 %vm51_vm0, %v2059_v37 }
 0x101   :  { %3887 = vmatmul.mubr.msk.f32.gmra.mrb[2].mxu1 %vm38_vm2, %v1817_v38 }
 0x102   :  { %3881 = vmatmul.mubr.msk.f32.gmra.mrb[2].mxu0 %vm38_vm2, %v1817_v38  ;;  %2017 = vmatprep.mubr.f32.mxu1 %v4142_v2 }
 0x103   :  { %1928 = vmatprep.mubr.f32.mxu0 %v4142_v2 }
 0x105   :  { %3888 = vmatmul.mubr.msk.f32.gmra.mrb[4].mxu1 %vm38_vm2, %v1818_v39 }
 0x106   :  { %3882 = vmatmul.mubr.msk.f32.gmra.mrb[4].mxu0 %vm38_vm2, %v1818_v39  ;;  %2023 = vmatprep.mubr.f32.mxu1 %v4142_v2 }
 0x107   :  { %1934 = vmatprep.mubr.f32.mxu0 %v4142_v2 }
 0x109   :  { %3889 = vmatmul.mubr.msk.f32.gmra.mrb[6].mxu1 %vm38_vm2, %v1819_v40 }
 0x10a   :  { %3883 = vmatmul.mubr.msk.f32.gmra.mrb[6].mxu0 %vm38_vm2, %v1819_v40  ;;  %2235 = vmatprep.mubr.f32.mxu1 %v4142_v2 }
 0x10b   :  { %2146 = vmatprep.mubr.f32.mxu0 %v4142_v2 }
 0x10d   :  { %3898 = vmatmul.mubr.msk.f32.vlgmr.msra.gmra.mrb[0].mxu1 %vm38_vm2, %v2046_v41 }
 0x10e   :  { %3892 = vmatmul.mubr.msk.f32.vlgmr.msra.gmra.mrb[0].mxu0 %vm38_vm2, %v2046_v41  ;;  %2241 = vmatprep.mubr.f32.mxu1 %v4142_v2 }
 0x10f   :  { %2152 = vmatprep.mubr.f32.mxu0 %v4142_v2 }
 0x111   :  { %3899 = vmatmul.mubr.msk.f32.gmra.mrb[2].mxu1 %vm38_vm2, %v2047_v42 }
 0x112   :  { %3893 = vmatmul.mubr.msk.f32.gmra.mrb[2].mxu0 %vm38_vm2, %v2047_v42  ;;  %2247 = vmatprep.mubr.f32.mxu1 %v4142_v2 }
 0x113   :  { %2158 = vmatprep.mubr.f32.mxu0 %v4142_v2 }
 0x115   :  { %3900 = vmatmul.mubr.msk.f32.gmra.mrb[4].mxu1 %vm38_vm2, %v2048_v43 }
 0x116   :  { %3894 = vmatmul.mubr.msk.f32.gmra.mrb[4].mxu0 %vm38_vm2, %v2048_v43  ;;  %2253 = vmatprep.mubr.f32.mxu1 %v4142_v2  ;;  %v2443_v43 = vld [vmem:[%s5004_s1 + $0x148] sm:$0x7] }
 0x117   :  { %2164 = vmatprep.mubr.f32.mxu0 %v4142_v2 }
 0x119   :  { %3901 = vmatmul.mubr.msk.f32.gmra.mrb[6].mxu1 %vm38_vm2, %v2049_v44 }
 0x11a   :  { %3895 = vmatmul.mubr.msk.f32.gmra.mrb[6].mxu0 %vm38_vm2, %v2049_v44  ;;  %2432 = vmatprep.mubr.f32.mxu1 %v4142_v2 }
 0x11b   :  { %2361 = vmatprep.mubr.f32.mxu0 %v4142_v2 }
 0x1e0   :  { %v2237_v45 = vpop.f32.mrb[0].mxu1 }
 0x1e1   :  { %v2148_v46 = vpop.f32.mrb[0].mxu0  ;;  %v2239_v47 = vpop.f32.mrb[1].mxu1  ;;  %v2278_v50 = vmax.f32 %v2237_v45, 0.0 }
 0x1e2   :  { %v2150_v48 = vpop.f32.mrb[1].mxu0  ;;  %v2276_v54 = vmax.f32 %v2148_v46, 0.0  ;;  %v2279_v55 = vmax.f32 %v2239_v47, 0.0 }
 0x1e3   :  { %v2277_v59 = vmax.f32 %v2150_v48, 0.0 }
 0x1e4   :  { %v2243_v49 = vpop.f32.mrb[2].mxu1 }
 0x1e5   :  { %v2282_v51 = vmax.f32 %v2243_v49, 0.0  ;;  %v2154_v52 = vpop.f32.mrb[2].mxu0  ;;  %v2245_v53 = vpop.f32.mrb[3].mxu1 }
 0x1e6   :  { %v2280_v56 = vmax.f32 %v2154_v52, 0.0  ;;  %v2283_v57 = vmax.f32 %v2245_v53, 0.0  ;;  %v2156_v58 = vpop.f32.mrb[3].mxu0 }
 0x1e7   :  { %v3956_v60 = vpack.c.bf16 %v2282_v51, %v2278_v50  ;;  %v2281_v61 = vmax.f32 %v2156_v58, 0.0  ;;  %v2755_v51 = vld [vmem:[%s5004_s1 + $0x158] sm:$0x7] }
 0x1e8   :  { %v3948_v62 = vpack.c.bf16 %v2280_v56, %v2276_v54  ;;  %v3954_v63 = vpack.c.bf16 %v2283_v57, %v2279_v55  ;;  %v2249_v0 = vpop.f32.mrb[4].mxu1 }
 0x1e9   :  { %v3946_v1 = vpack.c.bf16 %v2281_v61, %v2277_v59  ;;  %v2160_v3 = vpop.f32.mrb[4].mxu0  ;;  %v2251_v4 = vpop.f32.mrb[5].mxu1  ;;  %v2286_v7 = vmax.f32 %v2249_v0, 0.0  ;;  %v2920_v59 = vld [vmem:[%s5004_s1 + $0x160] sm:$0x7] }
 0x1ea   :  { %v2162_v5 = vpop.f32.mrb[5].mxu0  ;;  %3955 = vmatprep.subr.bf16.mxu1 %v3954_v63  ;;  %v2284_v11 = vmax.f32 %v2160_v3, 0.0  ;;  %v2287_v12 = vmax.f32 %v2251_v4, 0.0  ;;  %v3085_v4 = vld [vmem:[%s5004_s1 + $0x168] sm:$0x7] }
 0x1eb   :  { %3947 = vmatprep.subr.bf16.mxu0 %v3946_v1  ;;  %3957 = vmatpush1.bf16.msra.mxu1 %v3956_v60  ;;  %v2285_v16 = vmax.f32 %v2162_v5, 0.0 }
 0x1ec   :  { %v2255_v6 = vpop.f32.mrb[6].mxu1  ;;  %3949 = vmatpush1.bf16.msra.mxu0 %v3948_v62 }
 0x1ed   :  { %v2290_v8 = vmax.f32 %v2255_v6, 0.0  ;;  %v2166_v9 = vpop.f32.mrb[6].mxu0  ;;  %v2257_v10 = vpop.f32.mrb[7].mxu1 }
 0x1ee   :  { %v2288_v13 = vmax.f32 %v2166_v9, 0.0  ;;  %v2291_v14 = vmax.f32 %v2257_v10, 0.0  ;;  %v2168_v15 = vpop.f32.mrb[7].mxu0  ;;  %v4152_v9 = vmov 1966171168  }
 0x1ef   :  { %v3960_v17 = vpack.c.bf16 %v2290_v8, %v2286_v7  ;;  %v2289_v18 = vmax.f32 %v2168_v15, 0.0  ;;  %v3250_v8 = vld [vmem:[%s5004_s1 + $0x170] sm:$0x7]  ;;  %v3417_v10 = vunpack.c.l.s4 %v4152_v9  ;;  %s4155_s1 = smov 16  }
 0x1f0   :  { %v3952_v19 = vpack.c.bf16 %v2288_v13, %v2284_v11  ;;  %v3958_v20 = vpack.c.bf16 %v2291_v14, %v2287_v12  ;;  %v3419_v11 = vlaneseq }
 0x1f1   :  { %v3950_v21 = vpack.c.bf16 %v2289_v18, %v2285_v16  ;;  %v3418_v12 = vunpack.c.0.s8 %v3417_v10 }
 0x1f2   :  { %3959 = vmatprep.subr.bf16.mxu1 %v3958_v20  ;;  %v3420_v13 = vshrl.u32 %v3419_v11, 7 }
 0x1f3   :  { %3951 = vmatprep.subr.bf16.mxu0 %v3950_v21  ;;  %3961 = vmatpush1.bf16.msra.mxu1 %v3960_v17 }
 0x1f4   :  { %3953 = vmatpush1.bf16.msra.mxu0 %v3952_v19  ;;  %v3421_v14 = vsub.s32 %v3418_v12, %v3420_v13  ;;  %v4686_v16 = vsub.s32 0, %v3420_v13 }
 0x1f6   :  { %3903 = vmatmul.mubr.msk.f32.vlgmr.msra.gmra.mrb[8].mxu1 %vm2293_vm11, %v2292_v22 }
 0x1f7   :  { %3902 = vmatmul.mubr.msk.f32.vlgmr.msra.gmra.mrb[8].mxu0 %vm2293_vm11, %v2292_v22  ;;  %2603 = vmatprep.mubr.f32.mxu1 %v4142_v2 }
 0x1f8   :  { %2532 = vmatprep.mubr.f32.mxu0 %v4142_v2 }
 0x2c9   :  { %v2434_v23 = vpop.f32.mrb[8].mxu1 }
 0x2ca   :  { %v2441_v24 = vmax.f32 %v2434_v23, 0.0  ;;  %v2363_v25 = vpop.f32.mrb[8].mxu0  ;;  %v2436_v26 = vpop.f32.mrb[9].mxu1 }
 0x2cb   :  { %v2365_v27 = vpop.f32.mrb[9].mxu0  ;;  %v2439_v29 = vmax.f32 %v2363_v25, 0.0  ;;  %v2442_v30 = vmax.f32 %v2436_v26, 0.0 }
 0x2cc   :  { %v2440_v28 = vmax.f32 %v2365_v27, 0.0  ;;  %2453 = vrot.lane.b32.xlu1 %v2441_v24, %s4143_s13 }
 0x2ce   :  { %2451 = vrot.lane.b32.xlu0 %v2440_v28, %s4143_s13 }
 0x2d0   :  { %2455 = vrot.lane.b32.xlu1 %v2442_v30, %s4143_s13 }
 0x2d2   :  { %2449 = vrot.lane.b32.xlu0 %v2439_v29, %s4143_s13 }
 0x2d4   :  { %2760 = vrot.lane.b32.xlu1 %v2441_v24, %s4144_s0 }
 0x2d6   :  { %2758 = vrot.lane.b32.xlu0 %v2440_v28, %s4144_s0 }
 0x2d8   :  { %2762 = vrot.lane.b32.xlu1 %v2442_v30, %s4144_s0 }
 0x2da   :  { %2756 = vrot.lane.b32.xlu0 %v2439_v29, %s4144_s0 }
 0x2dc   :  { %2925 = vrot.lane.b32.xlu1 %v2441_v24, %s4145_s14 }
 0x2de   :  { %2923 = vrot.lane.b32.xlu0 %v2440_v28, %s4145_s14 }
 0x2e0   :  { %2927 = vrot.lane.b32.xlu1 %v2442_v30, %s4145_s14 }
 0x2e2   :  { %2921 = vrot.lane.b32.xlu0 %v2439_v29, %s4145_s14 }
 0x2e4   :  { %3090 = vrot.lane.b32.xlu1 %v2441_v24, %s4146_s15 }
 0x2e6   :  { %3088 = vrot.lane.b32.xlu0 %v2440_v28, %s4146_s15 }
 0x2e8   :  { %3092 = vrot.lane.b32.xlu1 %v2442_v30, %s4146_s15 }
 0x2ea   :  { %3086 = vrot.lane.b32.xlu0 %v2439_v29, %s4146_s15 }
 0x2ec   :  { %3255 = vrot.lane.b32.xlu1 %v2441_v24, %s4147_s16 }
 0x2ee   :  { %3253 = vrot.lane.b32.xlu0 %v2440_v28, %s4147_s16 }
 0x2f0   :  { %3257 = vrot.lane.b32.xlu1 %v2442_v30, %s4147_s16 }
 0x2f2   :  { %3251 = vrot.lane.b32.xlu0 %v2439_v29, %s4147_s16 }
 0x33e   :  { %v2454_v31 = vpop.permute.xlu1 %2453 }
 0x340   :  { %v2452_v32 = vpop.permute.xlu0 %2451 }
 0x341   :  { %v2458_v33 = vsel %vm34_vm1, %v2452_v32, %v2454_v31 }
 0x342   :  { %v2456_v34 = vpop.permute.xlu1 %2455  ;;  %2468 = vmatprep.subr.mxu0 %v2458_v33 }
 0x343   :  { %v2459_v36 = vsel %vm34_vm1, %v2454_v31, %v2456_v34  ;;  %2539 = vmatprep.subr.mxu1 %v2456_v34 }
 0x344   :  { %2540 = vmatpush1.msra.mxu1 %v2459_v36  ;;  %v2450_v37 = vpop.permute.xlu0 %2449 }
 0x345   :  { %v2457_v38 = vsel %vm34_vm1, %v2450_v37, %v2452_v32  ;;  %3905 = vmatmul.mubr.msk.f32.vlgmr.msra.gmra.mrb[10].mxu1 %vm2464_vm12, %v2444_v35  ;;  %2684 = vmatprep.subr.mxu1 %v2442_v30 }
 0x346   :  { %2685 = vmatpush1.msra.mxu1 %v2441_v24  ;;  %v2761_v39 = vpop.permute.xlu1 %2760  ;;  %2469 = vmatpush1.msra.mxu0 %v2457_v38 }
 0x347   :  { %3904 = vmatmul.mubr.msk.f32.vlgmr.msra.gmra.mrb[10].mxu0 %vm2464_vm12, %v2444_v35  ;;  %2613 = vmatprep.subr.mxu0 %v2440_v28 }
 0x348   :  { %2614 = vmatpush1.msra.mxu0 %v2439_v29  ;;  %v2759_v40 = vpop.permute.xlu0 %2758  ;;  %2748 = vmatprep.mubr.f32.mxu1 %v4142_v2 }
 0x349   :  { %v2765_v41 = vsel %vm448_vm3, %v2759_v40, %v2761_v39  ;;  %2677 = vmatprep.mubr.f32.mxu0 %v4142_v2 }
 0x34a   :  { %v2763_v42 = vpop.permute.xlu1 %2762  ;;  %2774 = vmatprep.subr.mxu0 %v2765_v41 }
 0x34b   :  { %v2766_v44 = vsel %vm448_vm3, %v2761_v39, %v2763_v42  ;;  %2845 = vmatprep.subr.mxu1 %v2763_v42 }
 0x34c   :  { %v2757_v45 = vpop.permute.xlu0 %2756 }
 0x34d   :  { %v2764_v46 = vsel %vm448_vm3, %v2757_v45, %v2759_v40  ;;  %3907 = vmatmul.mubr.msk.f32.vlgmr.msra.gmra.mrb[10].mxu1 %vm2464_vm12, %v2443_v43 }
 0x34e   :  { %2846 = vmatpush1.msra.mxu1 %v2766_v44  ;;  %v2926_v47 = vpop.permute.xlu1 %2925  ;;  %2909 = vmatprep.mubr.f32.mxu1 %v4142_v2 }
 0x34f   :  { %3906 = vmatmul.mubr.msk.f32.vlgmr.msra.gmra.mrb[10].mxu0 %vm2464_vm12, %v2443_v43 }
 0x350   :  { %v2924_v48 = vpop.permute.xlu0 %2923  ;;  %2775 = vmatpush1.msra.mxu0 %v2764_v46  ;;  %2838 = vmatprep.mubr.f32.mxu0 %v4142_v2 }
 0x351   :  { %v2930_v49 = vsel %vm678_vm4, %v2924_v48, %v2926_v47 }
 0x352   :  { %v2928_v50 = vpop.permute.xlu1 %2927  ;;  %2939 = vmatprep.subr.mxu0 %v2930_v49 }
 0x353   :  { %v2931_v52 = vsel %vm678_vm4, %v2926_v47, %v2928_v50  ;;  %3010 = vmatprep.subr.mxu1 %v2928_v50 }
 0x354   :  { %v2922_v53 = vpop.permute.xlu0 %2921 }
 0x355   :  { %v2929_v54 = vsel %vm678_vm4, %v2922_v53, %v2924_v48  ;;  %3909 = vmatmul.mubr.msk.f32.vlgmr.msra.gmra.mrb[10].mxu1 %vm2464_vm12, %v2755_v51 }
 0x356   :  { %3011 = vmatpush1.msra.mxu1 %v2931_v52  ;;  %v3091_v55 = vpop.permute.xlu1 %3090  ;;  %3074 = vmatprep.mubr.f32.mxu1 %v4142_v2 }
 0x357   :  { %3908 = vmatmul.mubr.msk.f32.vlgmr.msra.gmra.mrb[10].mxu0 %vm2464_vm12, %v2755_v51 }
 0x358   :  { %2940 = vmatpush1.msra.mxu0 %v2929_v54  ;;  %v3089_v56 = vpop.permute.xlu0 %3088  ;;  %3003 = vmatprep.mubr.f32.mxu0 %v4142_v2 }
 0x359   :  { %v3095_v57 = vsel %vm908_vm5, %v3089_v56, %v3091_v55 }
 0x35a   :  { %v3093_v58 = vpop.permute.xlu1 %3092  ;;  %3104 = vmatprep.subr.mxu0 %v3095_v57 }
 0x35b   :  { %v3096_v60 = vsel %vm908_vm5, %v3091_v55, %v3093_v58  ;;  %3175 = vmatprep.subr.mxu1 %v3093_v58 }
 0x35c   :  { %v3087_v61 = vpop.permute.xlu0 %3086 }
 0x35d   :  { %v3094_v62 = vsel %vm908_vm5, %v3087_v61, %v3089_v56  ;;  %3911 = vmatmul.mubr.msk.f32.vlgmr.msra.gmra.mrb[10].mxu1 %vm2464_vm12, %v2920_v59 }
 0x35e   :  { %3176 = vmatpush1.msra.mxu1 %v3096_v60  ;;  %v3256_v63 = vpop.permute.xlu1 %3255  ;;  %3239 = vmatprep.mubr.f32.mxu1 %v4142_v2 }
 0x35f   :  { %3910 = vmatmul.mubr.msk.f32.vlgmr.msra.gmra.mrb[10].mxu0 %vm2464_vm12, %v2920_v59 }
 0x360   :  { %3105 = vmatpush1.msra.mxu0 %v3094_v62  ;;  %v3254_v0 = vpop.permute.xlu0 %3253  ;;  %3168 = vmatprep.mubr.f32.mxu0 %v4142_v2 }
 0x361   :  { %v3260_v1 = vsel %vm1138_vm6, %v3254_v0, %v3256_v63 }
 0x362   :  { %v3258_v3 = vpop.permute.xlu1 %3257  ;;  %3269 = vmatprep.subr.mxu0 %v3260_v1 }
 0x363   :  { %v3261_v5 = vsel %vm1138_vm6, %v3256_v63, %v3258_v3  ;;  %3340 = vmatprep.subr.mxu1 %v3258_v3 }
 0x364   :  { %v3252_v6 = vpop.permute.xlu0 %3251 }
 0x365   :  { %v3259_v7 = vsel %vm1138_vm6, %v3252_v6, %v3254_v0  ;;  %3913 = vmatmul.mubr.msk.f32.vlgmr.msra.gmra.mrb[10].mxu1 %vm2464_vm12, %v3085_v4 }
 0x366   :  { %3341 = vmatpush1.msra.mxu1 %v3261_v5  ;;  %3404 = vmatprep.mubr.f32.mxu1 %v4142_v2 }
 0x367   :  { %3912 = vmatmul.mubr.msk.f32.vlgmr.msra.gmra.mrb[10].mxu0 %vm2464_vm12, %v3085_v4 }
 0x368   :  { %3270 = vmatpush1.msra.mxu0 %v3259_v7  ;;  %3333 = vmatprep.mubr.f32.mxu0 %v4142_v2 }
 0x36d   :  { %3915 = vmatmul.mubr.msk.f32.vlgmr.msra.gmra.mrb[10].mxu1 %vm2464_vm12, %v3250_v8 }
 0x36f   :  { %3914 = vmatmul.mubr.msk.f32.vlgmr.msra.gmra.mrb[10].mxu0 %vm2464_vm12, %v3250_v8 }
 0x440   :  { %v3406_v15 = vpop.f32.mrb[10].mxu1 }
 0x441   :  { %v3603_v17 = vrot.slane %v3406_v15, %v3421_v14  ;;  %v3408_v18 = vpop.f32.mrb[11].mxu1 }
 0x442   :  { %v3730_v2 = vrot.slane %v3408_v18, %v3421_v14  ;;  %v3335_v19 = vpop.f32.mrb[10].mxu0 }
 0x443   :  { %v3604_v20 = vcombine.high %v3603_v17, %v3603_v17  ;;  %v3611_v21 = vrot.slane %v3603_v17, %v3421_v14  ;;  %v3422_v22 = vrot.slane %v3335_v19, %v3421_v14  ;;  %v3337_v23 = vpop.f32.mrb[11].mxu0 }
 0x444   :  { %v3731_v24 = vcombine.high %v3730_v2, %v3730_v2  ;;  %v3738_v25 = vrot.slane %v3730_v2, %v3421_v14  ;;  %v3549_v26 = vrot.slane %v3337_v23, %v3421_v14 }
 0x445   :  { %v3618_v27 = vrot.slane %v3604_v20, %v3421_v14  ;;  %v3619_v28 = vcombine.high %v3611_v21, %v3611_v21  ;;  %3916 = vst.msk [vmem:[%s5005_s2 + $0x30] sm:$0x1] %vm3442_vm13, %v3611_v21  ;;  %v3630_v29 = vrot.slane %v3611_v21, %v4686_v16  ;;  %v3423_v30 = vcombine.high %v3422_v22, %v3422_v22 }
 0x446   :  { %v4693_v31 = vrot.slane %v3731_v24, %v3421_v14  ;;  %v4695_v32 = vcombine.high %v3738_v25, %v3738_v25  ;;  %3940 = vst.msk [vmem:[%s5005_s2 + $0x38] sm:$0x1] %vm3442_vm13, %v3738_v25  ;;  %v3430_v33 = vrot.slane %v3422_v22, %v3421_v14  ;;  %v3550_v34 = vcombine.high %v3549_v26, %v3549_v26 }
 0x447   :  { %3917 = vst.msk [vmem:[%s5005_s2 + $0x40] sm:$0x1] %vm3442_vm13, %v3618_v27  ;;  %3918 = vst.msk [vmem:[%s5005_s2 + $0x50] sm:$0x1] %vm3442_vm13, %v3619_v28  ;;  %v3437_v35 = vrot.slane %v3423_v30, %v3421_v14  ;;  %v3557_v36 = vrot.slane %v3549_v26, %v3421_v14  ;;  %3651 = vrot.lane.b32.xlu1 %v3630_v29, %s4146_s15  ;;  %3639 = vrot.lane.b32.xlu0 %v3630_v29, %s4144_s0 }
 0x448   :  { %3941 = vst.msk [vmem:[%s5005_s2 + $0x48] sm:$0x1] %vm3442_vm13, %v4693_v31  ;;  %3942 = vst.msk [vmem:[%s5005_s2 + $0x58] sm:$0x1] %vm3442_vm13, %v4695_v32  ;;  %v3760_v37 = vrot.slane %v4693_v31, %v4686_v16  ;;  %v3438_v38 = vcombine.high %v3430_v33, %v3430_v33  ;;  %v4726_v39 = vrot.slane %v3550_v34, %v3421_v14 }
 0x449   :  { %3443 = vst.msk [vmem:[%s5005_s2] sm:$0x1] %vm3442_vm13, %v3430_v33  ;;  %3444 = vst.msk [vmem:[%s5005_s2 + $0x10] sm:$0x1] %vm3442_vm13, %v3437_v35  ;;  %v3565_v40 = vcombine.high %v3557_v36, %v3557_v36  ;;  %v3764_v42 = vrot.slane %v4695_v32, %v4686_v16  ;;  %v3756_v44 = vrot.slane %v3738_v25, %v4686_v16 }
 0x44a   :  { %3569 = vst.msk [vmem:[%s5005_s2 + $0x8] sm:$0x1] %vm3442_vm13, %v3557_v36  ;;  %3445 = vst.msk [vmem:[%s5005_s2 + $0x20] sm:$0x1] %vm3442_vm13, %v3438_v38  ;;  %v3579_v41 = vrot.slane %v4726_v39, %v4686_v16  ;;  %v3449_v45 = vrot.slane %v3430_v33, %v4686_v16  ;;  %v3634_v46 = vrot.slane %v3618_v27, %v4686_v16 }
 0x44b   :  { %3570 = vst.msk [vmem:[%s5005_s2 + $0x18] sm:$0x1] %vm3442_vm13, %v4726_v39  ;;  %3571 = vst.msk [vmem:[%s5005_s2 + $0x28] sm:$0x1] %vm3442_vm13, %v3565_v40  ;;  %3675 = vrot.lane.b32.xlu1 %v3630_v29, %s4150_s19  ;;  %v3583_v43 = vrot.slane %v3565_v40, %v4686_v16  ;;  %3663 = vrot.lane.b32.xlu0 %v3630_v29, %s4148_s17  ;;  %v3638_v47 = vrot.slane %v3619_v28, %v4686_v16 }
 0x44c   :  { %v3575_v48 = vrot.slane %v3557_v36, %v4686_v16  ;;  %v3453_v49 = vrot.slane %v3437_v35, %v4686_v16  ;;  %v3457_v50 = vrot.slane %v3438_v38, %v4686_v16 }
 0x44f   :  { %3699 = vrot.lane.b32.xlu1 %v3630_v29, %s4153_s22  ;;  %3687 = vrot.lane.b32.xlu0 %v3630_v29, %s4154_s23 }
 0x453   :  { %3765 = vrot.lane.b32.xlu1 %v3756_v44, %s4144_s0  ;;  %3711 = vrot.lane.b32.xlu0 %v3630_v29, %s4155_s1 }
 0x457   :  { %3470 = vrot.lane.b32.xlu1 %v3449_v45, %s4146_s15  ;;  %3458 = vrot.lane.b32.xlu0 %v3449_v45, %s4144_s0 }
 0x45b   :  { %3494 = vrot.lane.b32.xlu1 %v3449_v45, %s4150_s19  ;;  %3482 = vrot.lane.b32.xlu0 %v3449_v45, %s4148_s17 }
 0x45f   :  { %3518 = vrot.lane.b32.xlu1 %v3449_v45, %s4153_s22  ;;  %3506 = vrot.lane.b32.xlu0 %v3449_v45, %s4154_s23 }
 0x463   :  { %3641 = vrot.lane.b32.xlu1 %v3634_v46, %s4144_s0  ;;  %3530 = vrot.lane.b32.xlu0 %v3449_v45, %s4155_s1 }
 0x467   :  { %3655 = vrot.lane.b32.xlu1 %v3638_v47, %s4146_s15  ;;  %3643 = vrot.lane.b32.xlu0 %v3638_v47, %s4144_s0 }
 0x46b   :  { %3665 = vrot.lane.b32.xlu1 %v3634_v46, %s4148_s17  ;;  %3653 = vrot.lane.b32.xlu0 %v3634_v46, %s4146_s15 }
 0x46f   :  { %3679 = vrot.lane.b32.xlu1 %v3638_v47, %s4150_s19  ;;  %3667 = vrot.lane.b32.xlu0 %v3638_v47, %s4148_s17 }
 0x473   :  { %3689 = vrot.lane.b32.xlu1 %v3634_v46, %s4154_s23  ;;  %3677 = vrot.lane.b32.xlu0 %v3634_v46, %s4150_s19 }
 0x477   :  { %3703 = vrot.lane.b32.xlu1 %v3638_v47, %s4153_s22  ;;  %3691 = vrot.lane.b32.xlu0 %v3638_v47, %s4154_s23 }
 0x47b   :  { %3713 = vrot.lane.b32.xlu1 %v3634_v46, %s4155_s1  ;;  %3701 = vrot.lane.b32.xlu0 %v3634_v46, %s4153_s22 }
 0x47f   :  { %3584 = vrot.lane.b32.xlu1 %v3575_v48, %s4144_s0  ;;  %3715 = vrot.lane.b32.xlu0 %v3638_v47, %s4155_s1 }
 0x483   :  { %3460 = vrot.lane.b32.xlu1 %v3453_v49, %s4144_s0  ;;  %3462 = vrot.lane.b32.xlu0 %v3457_v50, %s4144_s0 }
 0x487   :  { %3474 = vrot.lane.b32.xlu1 %v3457_v50, %s4146_s15  ;;  %3472 = vrot.lane.b32.xlu0 %v3453_v49, %s4146_s15 }
 0x48b   :  { %3484 = vrot.lane.b32.xlu1 %v3453_v49, %s4148_s17  ;;  %3486 = vrot.lane.b32.xlu0 %v3457_v50, %s4148_s17 }
 0x48f   :  { %3498 = vrot.lane.b32.xlu1 %v3457_v50, %s4150_s19  ;;  %3496 = vrot.lane.b32.xlu0 %v3453_v49, %s4150_s19 }
 0x493   :  { %3508 = vrot.lane.b32.xlu1 %v3453_v49, %s4154_s23  ;;  %3510 = vrot.lane.b32.xlu0 %v3457_v50, %s4154_s23 }
 0x497   :  { %3522 = vrot.lane.b32.xlu1 %v3457_v50, %s4153_s22  ;;  %3520 = vrot.lane.b32.xlu0 %v3453_v49, %s4153_s22 }
 0x49b   :  { %3532 = vrot.lane.b32.xlu1 %v3453_v49, %s4155_s1  ;;  %3534 = vrot.lane.b32.xlu0 %v3457_v50, %s4155_s1 }
 0x49f   :  { %3588 = vrot.lane.b32.xlu1 %v3583_v43, %s4144_s0  ;;  %3586 = vrot.lane.b32.xlu0 %v3579_v41, %s4144_s0 }
 0x4a3   :  { %3769 = vrot.lane.b32.xlu1 %v3764_v42, %s4144_s0  ;;  %3767 = vrot.lane.b32.xlu0 %v3760_v37, %s4144_s0 }
 0x4b9   :  { %v3652_v51 = vpop.permute.xlu1 %3651  ;;  %v3640_v52 = vpop.permute.xlu0 %3639 }
 0x4ba   :  { %3922 = vst.msk [vmem:[%s5005_s2 + $0x32] sm:$0x1] %vm3442_vm13, %v3652_v51  ;;  %3919 = vst.msk [vmem:[%s5005_s2 + $0x31] sm:$0x1] %vm3442_vm13, %v3640_v52 }
 0x4bd   :  { %v3676_v53 = vpop.permute.xlu1 %3675  ;;  %v3664_v54 = vpop.permute.xlu0 %3663 }
 0x4be   :  { %3928 = vst.msk [vmem:[%s5005_s2 + $0x34] sm:$0x1] %vm3442_vm13, %v3676_v53  ;;  %3925 = vst.msk [vmem:[%s5005_s2 + $0x33] sm:$0x1] %vm3442_vm13, %v3664_v54 }
 0x4c1   :  { %v3700_v55 = vpop.permute.xlu1 %3699  ;;  %v3688_v56 = vpop.permute.xlu0 %3687 }
 0x4c2   :  { %3934 = vst.msk [vmem:[%s5005_s2 + $0x36] sm:$0x1] %vm3442_vm13, %v3700_v55  ;;  %3931 = vst.msk [vmem:[%s5005_s2 + $0x35] sm:$0x1] %vm3442_vm13, %v3688_v56 }
 0x4c5   :  { %v3766_v57 = vpop.permute.xlu1 %3765  ;;  %v3712_v58 = vpop.permute.xlu0 %3711 }
 0x4c6   :  { %3943 = vst.msk [vmem:[%s5005_s2 + $0x39] sm:$0x1] %vm3442_vm13, %v3766_v57  ;;  %3937 = vst.msk [vmem:[%s5005_s2 + $0x37] sm:$0x1] %vm3442_vm13, %v3712_v58 }
 0x4c9   :  { %v3471_v59 = vpop.permute.xlu1 %3470  ;;  %v3459_v60 = vpop.permute.xlu0 %3458 }
 0x4ca   :  { %3479 = vst.msk [vmem:[%s5005_s2 + $0x2] sm:$0x1] %vm3442_vm13, %v3471_v59  ;;  %3467 = vst.msk [vmem:[%s5005_s2 + $0x1] sm:$0x1] %vm3442_vm13, %v3459_v60 }
 0x4cd   :  { %v3495_v61 = vpop.permute.xlu1 %3494  ;;  %v3483_v62 = vpop.permute.xlu0 %3482 }
 0x4ce   :  { %3503 = vst.msk [vmem:[%s5005_s2 + $0x4] sm:$0x1] %vm3442_vm13, %v3495_v61  ;;  %3491 = vst.msk [vmem:[%s5005_s2 + $0x3] sm:$0x1] %vm3442_vm13, %v3483_v62 }
 0x4d1   :  { %v3519_v63 = vpop.permute.xlu1 %3518  ;;  %v3507_v0 = vpop.permute.xlu0 %3506 }
 0x4d2   :  { %3527 = vst.msk [vmem:[%s5005_s2 + $0x6] sm:$0x1] %vm3442_vm13, %v3519_v63  ;;  %3515 = vst.msk [vmem:[%s5005_s2 + $0x5] sm:$0x1] %vm3442_vm13, %v3507_v0 }
 0x4d5   :  { %v3642_v1 = vpop.permute.xlu1 %3641  ;;  %v3531_v3 = vpop.permute.xlu0 %3530 }
 0x4d6   :  { %3920 = vst.msk [vmem:[%s5005_s2 + $0x41] sm:$0x1] %vm3442_vm13, %v3642_v1  ;;  %3539 = vst.msk [vmem:[%s5005_s2 + $0x7] sm:$0x1] %vm3442_vm13, %v3531_v3 }
 0x4d9   :  { %v3656_v4 = vpop.permute.xlu1 %3655  ;;  %v3644_v5 = vpop.permute.xlu0 %3643 }
 0x4da   :  { %3924 = vst.msk [vmem:[%s5005_s2 + $0x52] sm:$0x1] %vm3442_vm13, %v3656_v4  ;;  %3921 = vst.msk [vmem:[%s5005_s2 + $0x51] sm:$0x1] %vm3442_vm13, %v3644_v5 }
 0x4dd   :  { %v3666_v6 = vpop.permute.xlu1 %3665  ;;  %v3654_v7 = vpop.permute.xlu0 %3653 }
 0x4de   :  { %3926 = vst.msk [vmem:[%s5005_s2 + $0x43] sm:$0x1] %vm3442_vm13, %v3666_v6  ;;  %3923 = vst.msk [vmem:[%s5005_s2 + $0x42] sm:$0x1] %vm3442_vm13, %v3654_v7 }
 0x4e1   :  { %v3680_v8 = vpop.permute.xlu1 %3679  ;;  %v3668_v9 = vpop.permute.xlu0 %3667 }
 0x4e2   :  { %3930 = vst.msk [vmem:[%s5005_s2 + $0x54] sm:$0x1] %vm3442_vm13, %v3680_v8  ;;  %3927 = vst.msk [vmem:[%s5005_s2 + $0x53] sm:$0x1] %vm3442_vm13, %v3668_v9 }
 0x4e5   :  { %v3690_v10 = vpop.permute.xlu1 %3689  ;;  %v3678_v11 = vpop.permute.xlu0 %3677 }
 0x4e6   :  { %3932 = vst.msk [vmem:[%s5005_s2 + $0x45] sm:$0x1] %vm3442_vm13, %v3690_v10  ;;  %3929 = vst.msk [vmem:[%s5005_s2 + $0x44] sm:$0x1] %vm3442_vm13, %v3678_v11 }
 0x4e9   :  { %v3704_v12 = vpop.permute.xlu1 %3703  ;;  %v3692_v13 = vpop.permute.xlu0 %3691 }
 0x4ea   :  { %3936 = vst.msk [vmem:[%s5005_s2 + $0x56] sm:$0x1] %vm3442_vm13, %v3704_v12  ;;  %3933 = vst.msk [vmem:[%s5005_s2 + $0x55] sm:$0x1] %vm3442_vm13, %v3692_v13 }
 0x4ed   :  { %v3714_v14 = vpop.permute.xlu1 %3713  ;;  %v3702_v15 = vpop.permute.xlu0 %3701 }
 0x4ee   :  { %3938 = vst.msk [vmem:[%s5005_s2 + $0x47] sm:$0x1] %vm3442_vm13, %v3714_v14  ;;  %3935 = vst.msk [vmem:[%s5005_s2 + $0x46] sm:$0x1] %vm3442_vm13, %v3702_v15 }
 0x4f1   :  { %v3585_v16 = vpop.permute.xlu1 %3584  ;;  %v3716_v17 = vpop.permute.xlu0 %3715 }
 0x4f2   :  { %3593 = vst.msk [vmem:[%s5005_s2 + $0x9] sm:$0x1] %vm3442_vm13, %v3585_v16  ;;  %3939 = vst.msk [vmem:[%s5005_s2 + $0x57] sm:$0x1] %vm3442_vm13, %v3716_v17 }
 0x4f5   :  { %v3461_v18 = vpop.permute.xlu1 %3460  ;;  %v3463_v2 = vpop.permute.xlu0 %3462 }
 0x4f6   :  { %3468 = vst.msk [vmem:[%s5005_s2 + $0x11] sm:$0x1] %vm3442_vm13, %v3461_v18  ;;  %3469 = vst.msk [vmem:[%s5005_s2 + $0x21] sm:$0x1] %vm3442_vm13, %v3463_v2 }
 0x4f9   :  { %v3475_v19 = vpop.permute.xlu1 %3474  ;;  %v3473_v20 = vpop.permute.xlu0 %3472 }
 0x4fa   :  { %3481 = vst.msk [vmem:[%s5005_s2 + $0x22] sm:$0x1] %vm3442_vm13, %v3475_v19  ;;  %3480 = vst.msk [vmem:[%s5005_s2 + $0x12] sm:$0x1] %vm3442_vm13, %v3473_v20 }
 0x4fd   :  { %v3485_v21 = vpop.permute.xlu1 %3484  ;;  %v3487_v22 = vpop.permute.xlu0 %3486 }
 0x4fe   :  { %3492 = vst.msk [vmem:[%s5005_s2 + $0x13] sm:$0x1] %vm3442_vm13, %v3485_v21  ;;  %3493 = vst.msk [vmem:[%s5005_s2 + $0x23] sm:$0x1] %vm3442_vm13, %v3487_v22 }
 0x501   :  { %v3499_v23 = vpop.permute.xlu1 %3498  ;;  %v3497_v24 = vpop.permute.xlu0 %3496 }
 0x502   :  { %3505 = vst.msk [vmem:[%s5005_s2 + $0x24] sm:$0x1] %vm3442_vm13, %v3499_v23  ;;  %3504 = vst.msk [vmem:[%s5005_s2 + $0x14] sm:$0x1] %vm3442_vm13, %v3497_v24 }
 0x505   :  { %v3509_v25 = vpop.permute.xlu1 %3508  ;;  %v3511_v26 = vpop.permute.xlu0 %3510 }
 0x506   :  { %3516 = vst.msk [vmem:[%s5005_s2 + $0x15] sm:$0x1] %vm3442_vm13, %v3509_v25  ;;  %3517 = vst.msk [vmem:[%s5005_s2 + $0x25] sm:$0x1] %vm3442_vm13, %v3511_v26 }
 0x509   :  { %v3523_v27 = vpop.permute.xlu1 %3522  ;;  %v3521_v28 = vpop.permute.xlu0 %3520 }
 0x50a   :  { %3529 = vst.msk [vmem:[%s5005_s2 + $0x26] sm:$0x1] %vm3442_vm13, %v3523_v27  ;;  %3528 = vst.msk [vmem:[%s5005_s2 + $0x16] sm:$0x1] %vm3442_vm13, %v3521_v28 }
 0x50d   :  { %v3533_v29 = vpop.permute.xlu1 %3532  ;;  %v3535_v30 = vpop.permute.xlu0 %3534 }
 0x50e   :  { %3540 = vst.msk [vmem:[%s5005_s2 + $0x17] sm:$0x1] %vm3442_vm13, %v3533_v29  ;;  %3541 = vst.msk [vmem:[%s5005_s2 + $0x27] sm:$0x1] %vm3442_vm13, %v3535_v30 }
 0x511   :  { %v3589_v31 = vpop.permute.xlu1 %3588  ;;  %v3587_v32 = vpop.permute.xlu0 %3586 }
 0x512   :  { %3595 = vst.msk [vmem:[%s5005_s2 + $0x29] sm:$0x1] %vm3442_vm13, %v3589_v31  ;;  %3594 = vst.msk [vmem:[%s5005_s2 + $0x19] sm:$0x1] %vm3442_vm13, %v3587_v32 }
 0x515   :  { %v3770_v33 = vpop.permute.xlu1 %3769  ;;  %v3768_v34 = vpop.permute.xlu0 %3767 }
 0x516   :  { %3945 = vst.msk [vmem:[%s5005_s2 + $0x59] sm:$0x1] %vm3442_vm13, %v3770_v33  ;;  %3944 = vst.msk [vmem:[%s5005_s2 + $0x49] sm:$0x1] %vm3442_vm13, %v3768_v34 }

</bundles_post_ra>
